<compile_context>
chip_gen: v6e
topology: v6e:2x2x1
jax: 0.10.0
libtpu: 0.0.40
codegen_flags: <defaults>
</compile_context>

<pallas_src>
import functools

import jax
import jax.numpy as jnp
from jax import lax
from jax.experimental import pallas as pl
from jax.experimental.pallas import tpu as pltpu

F32 = jnp.float32
BF16 = jnp.bfloat16
_VMEM = pl.BlockSpec(memory_space=pltpu.MemorySpace.VMEM)
# 48 MiB scoped limit: leaves headroom below v7x's 64 MiB physical VMEM while
# still being comfortably inside v5e/v6e's 128 MiB.
_VMEM_LIMIT = 48 * 1024 * 1024
N_ITERS = 2                      # Set2Set processing steps (Set2Set(2*nclass, 2, 1))


def _recip(x):
    # EUP approximate reciprocal + one Newton-Raphson step -> ~f32 accuracy;
    # keeps the divide off the VALU without the ~1e-3 error of the raw approx.
    r = pl.reciprocal(x, approx=True)
    return r * (2.0 - x * r)


def _sigmoid(x):
    # exp and the (refined) reciprocal both ride the EUP slot.
    return _recip(1.0 + jnp.exp(-x))


# ---------------------------------------------------------------------------
# The single fused kernel
# ---------------------------------------------------------------------------
def _mynewgcn_kernel(a_ref, x_ref, memb_ref, lenmap_ref,
                     gw1_ref, gb1_ref, gw2_ref, gb2_ref,
                     w_hg_ref, w_rg_ref, b_g_ref,
                     fc1w_ref, fc1b_ref, fc2w_ref, fc2b_ref, fc3w_ref, fc3b_ref,
                     o_ref, *, nclass, batch, n_iters):
    D = 2 * nclass
    B = batch

    # ---- Stage 1: both GCN branches (gc1+gc2 / gc3+gc4), unrolled over branch.
    #      s = A_hat @ (relu(A_hat @ (X @ W1) + b1) @ W2) + b2
    s_br = []
    for br in range(2):
        a = a_ref[br]                                                   # (n, n) bf16
        xw = jnp.dot(x_ref[br], gw1_ref[br], preferred_element_type=F32)
        h = jnp.maximum(
            jnp.dot(a, xw.astype(BF16), preferred_element_type=F32) + gb1_ref[br],
            0.0)
        hw = jnp.dot(h.astype(BF16), gw2_ref[br], preferred_element_type=F32)
        s_br.append(jnp.dot(a, hw.astype(BF16), preferred_element_type=F32)
                    + gb2_ref[br])                                      # (n, nclass) f32
    su, sv = s_br
    su_b, sv_b = su.astype(BF16), sv.astype(BF16)

    # ---- Stage 2: interaction map + prime features (len_map hoisted to wrapper).
    #      All "transposed" products are dot_general contraction dims (no .T).
    im = lax.dot_general(su_b, sv_b, (((1,), (1,)), ((), ())),
                         preferred_element_type=F32)                    # su @ sv^T
    imap = (jnp.tanh(im) * lenmap_ref[...]).astype(BF16)                # (n_u, n_v)
    solute_prime = jnp.dot(imap, sv_b, preferred_element_type=F32)      # (n_u, nclass)
    solvent_prime = lax.dot_general(imap, su_b, (((0,), (0,)), ((), ())),
                                    preferred_element_type=F32)         # imap^T @ su
    # One lane-axis concat per branch, executed ONCE per forward (never hits HBM).
    feat_u = jnp.concatenate([su, solute_prime], axis=1).astype(BF16)   # (n, D)
    feat_v = jnp.concatenate([sv, solvent_prime], axis=1).astype(BF16)  # (n, D)
    feats = (feat_u, feat_v)

    # ---- Stage 3: Set2Set.  Both branches share the LSTM; the recurrent gate
    #      matmuls are batched on the row axis (rows 0:B solute, B:2B solvent).
    #      For a 1-layer LSTM q == h, so W_ih[:, :D] is folded into W_hh per gate.
    memb_u = memb_ref[0]
    memb_v = memb_ref[1]
    membs = (memb_u, memb_v)
    masks = (memb_u > 0.0, memb_v > 0.0)                  # hoisted out of the loop

    h = jnp.zeros((2 * B, D), F32)
    c = jnp.zeros((2 * B, D), F32)
    r = jnp.zeros((2 * B, D), F32)                        # "readout" half of q_star
    for _ in range(n_iters):                              # static unroll (n_iters = 2)
        hb = h.astype(BF16)
        rb = r.astype(BF16)
        gate = []
        for g in range(4):                                # PyTorch gate order i, f, g, o
            gate.append(jnp.dot(hb, w_hg_ref[g], preferred_element_type=F32)
                        + jnp.dot(rb, w_rg_ref[g], preferred_element_type=F32)
                        + b_g_ref[g])
        i_g = _sigmoid(gate[0])
        f_g = _sigmoid(gate[1])
        g_g = jnp.tanh(gate[2])
        o_g = _sigmoid(gate[3])
        c = f_g * c + i_g * g_g
        h = o_g * jnp.tanh(c)                             # == q for a 1-layer LSTM

        reads = []
        for br in range(2):                               # scores / readout per-branch
            q_br = h[br * B:(br + 1) * B].astype(BF16)                   # (B, D)
            s = lax.dot_general(q_br, feats[br], (((1,), (1,)), ((), ())),
                                preferred_element_type=F32)              # (B, n)
            s = jnp.where(masks[br], s, jnp.float32(-1e30))
            s = s - jnp.max(s, axis=-1, keepdims=True)
            p = jnp.exp(s) * membs[br]
            # clamp denominator: an all-masked (empty) graph yields 0, not NaN
            denom = jnp.maximum(jnp.sum(p, axis=-1, keepdims=True), 1e-20)
            alpha = (p * _recip(denom)).astype(BF16)
            reads.append(jnp.dot(alpha, feats[br], preferred_element_type=F32))
        r = jnp.concatenate(reads, axis=0)                # (2B, D), sublane-axis concat

    # ---- Stage 4: fused fc1 -> relu -> fc2 -> relu -> fc3 head.
    #      data = [q_u | r_u | q_v | r_v]; fc1 is consumed as 4 row chunks of its
    #      weight, so that lane-axis concat never materializes.
    parts = (h[0:B], r[0:B], h[B:2 * B], r[B:2 * B])
    h1 = fc1b_ref[...]
    for k in range(4):
        h1 = h1 + jnp.dot(parts[k].astype(BF16), fc1w_ref[k],
                          preferred_element_type=F32)
    h1 = jnp.maximum(h1, 0.0)
    h2 = jnp.maximum(
        jnp.dot(h1.astype(BF16), fc2w_ref[...], preferred_element_type=F32)
        + fc2b_ref[...], 0.0)
    o_ref[...] = (jnp.dot(h2.astype(BF16), fc3w_ref[...], preferred_element_type=F32)
                  + fc3b_ref[...])


# ---------------------------------------------------------------------------
# parameters (layout prep: pre-transposed / per-gate-split / bf16 MXU weights)
# ---------------------------------------------------------------------------
def init_params(key, nfeat, nhid, nclass):
    ks = jax.random.split(key, 9)
    s = 0.1
    D = 2 * nclass                  # Set2Set in_channels == LSTM hidden size
    d0 = 8 * nclass                 # cat(set2set(solute), set2set(solvent)) width
    d1, d2 = d0 // 4, d0 // 8       # original ratios 4096 -> 1024 -> 512 -> 1

    gc1_w = jax.random.normal(ks[0], (nfeat, nhid), F32) * s
    gc3_w = jax.random.normal(ks[1], (nfeat, nhid), F32) * s
    gc2_w = jax.random.normal(ks[2], (nhid, nclass), F32) * s
    gc4_w = jax.random.normal(ks[3], (nhid, nclass), F32) * s

    # Set2Set LSTM, PyTorch layout W_ih:(4D,2D), W_hh:(4D,D), gate order i,f,g,o.
    w_ih = jax.random.normal(ks[4], (4 * D, 2 * D), F32) * s
    w_hh = jax.random.normal(ks[5], (4 * D, D), F32) * s
    b_ih = jnp.zeros((4 * D,), F32)
    b_hh = jnp.zeros((4 * D,), F32)
    wih_t = w_ih.T                                      # (2D, 4D)
    whh_t = w_hh.T                                      # (D, 4D)
    # Per-gate split; fold the "q" half of W_ih into W_hh (exact: q == h for a
    # single-layer LSTM, and both are zero at iteration 0).
    w_hg = jnp.stack([wih_t[:D, g * D:(g + 1) * D] + whh_t[:, g * D:(g + 1) * D]
                      for g in range(4)])               # (4, D, D)
    w_rg = jnp.stack([wih_t[D:, g * D:(g + 1) * D]
                      for g in range(4)])               # (4, D, D)
    b_g = (b_ih + b_hh).reshape(4, 1, D)                # (4, 1, D)

    fc1_w = jax.random.normal(ks[6], (d0, d1), F32) * s
    fc2_w = jax.random.normal(ks[7], (d1, d2), F32) * s
    fc3_w = jax.random.normal(ks[8], (d2, 1), F32) * s

    return dict(
        # bf16 for every MXU operand (halves VMEM/HBM residency; f32 accumulation
        # happens in-kernel).  Biases stay f32.
        gcn_w1=jnp.stack([gc1_w, gc3_w]).astype(BF16),  # (2, nfeat, nhid)
        gcn_b1=jnp.zeros((2, 1, nhid), F32),
        gcn_w2=jnp.stack([gc2_w, gc4_w]).astype(BF16),  # (2, nhid, nclass)
        gcn_b2=jnp.zeros((2, 1, nclass), F32),
        lstm_w_hg=w_hg.astype(BF16),                    # (4, D, D)
        lstm_w_rg=w_rg.astype(BF16),                    # (4, D, D)
        lstm_b_g=b_g,                                   # (4, 1, D) f32
        # fc1 split into 4 row chunks matching data = [q_u | r_u | q_v | r_v]
        fc1_w=fc1_w.reshape(4, D, d1).astype(BF16),
        fc1_b=jnp.zeros((1, d1), F32),
        fc2_w=fc2_w.astype(BF16),
        fc2_b=jnp.zeros((1, d2), F32),
        fc3_w=fc3_w.astype(BF16),
        fc3_b=jnp.zeros((1, 1), F32),
    )


# ---------------------------------------------------------------------------
# forward: ONE pallas_call, everything stays in VMEM, only (B, 1) leaves chip
# ---------------------------------------------------------------------------
def forward(params, a_hat, x, memb):
    """a_hat:(2,n,n)  x:(2,n,nfeat)  memb:(2,B,n); branch 0=solute, 1=solvent."""
    _, n, nfeat = x.shape
    B = memb.shape[1]
    nhid = params['gcn_w1'].shape[2]
    nclass = params['gcn_w2'].shape[2]
    D = 2 * nclass
    d1 = params['fc1_w'].shape[2]
    d2 = params['fc2_w'].shape[1]

    # len_map depends only on the membership matrices -> hoisted out of the kernel.
    len_map = jnp.dot(memb[0].T, memb[1])               # (n_u, n_v) f32

    flops = (
        2 * (2 * n * (nfeat * nhid + n * nhid + nhid * nclass + n * nclass))   # GCNs
        + 2 * n * n * (3 * nclass) + 2 * n * n                                  # interaction
        + N_ITERS * (8 * 2 * (2 * B) * D * D + 2 * (2 * 2 * B * n * D))         # Set2Set
        + 2 * B * (4 * D * d1 + d1 * d2 + d2))                                  # fc head
    trans = n * n + N_ITERS * (4 * 2 * B * D + 2 * B * n)
    bytes_accessed = (
        2 * (2 * n * n + 2 * n * nfeat + 2 * nfeat * nhid + 2 * nhid * nclass
             + 8 * D * D + 4 * D * d1 + d1 * d2 + d2)                           # bf16
        + 4 * (2 * B * n + n * n + 2 * nhid + 2 * nclass + 4 * D
               + d1 + d2 + 1 + B))                                              # f32

    out = pl.pallas_call(
        functools.partial(_mynewgcn_kernel, nclass=nclass, batch=B, n_iters=N_ITERS),
        out_shape=jax.ShapeDtypeStruct((B, 1), F32),
        in_specs=[_VMEM] * 17,
        out_specs=_VMEM,
        compiler_params=pltpu.CompilerParams(vmem_limit_bytes=_VMEM_LIMIT),
        cost_estimate=pl.CostEstimate(flops=flops, transcendentals=trans,
                                      bytes_accessed=bytes_accessed),
    )(a_hat.astype(BF16), x.astype(BF16), memb, len_map,
      params['gcn_w1'], params['gcn_b1'], params['gcn_w2'], params['gcn_b2'],
      params['lstm_w_hg'], params['lstm_w_rg'], params['lstm_b_g'],
      params['fc1_w'], params['fc1_b'], params['fc2_w'], params['fc2_b'],
      params['fc3_w'], params['fc3_b'])
    return out                                          # (B, 1)


# ---------------------------------------------------------------------------
# driver
# ---------------------------------------------------------------------------
if __name__ == "__main__":
    B = 2                         # solute/solvent graph pairs in the batch
    n = 16                        # nodes per branch (solute == solvent size here)
    nfeat, nhid, nclass = 16, 32, 8
    # TODO(synk): at the real model size (nclass=512 -> fc1=Linear(4096,1024)) the
    # bf16 weights (~33 MiB) fit v7x's 64 MiB VMEM, but large graphs (big n) would
    # additionally need a row-tiled grid for the A_hat propagations; unequal
    # solute/solvent node counts would need per-branch padding before stacking.

    key = jax.random.PRNGKey(0)
    keys = jax.random.split(key, 6)

    # membership ("len") matrices: graph g owns a contiguous slice of nodes
    ids = jnp.repeat(jnp.arange(B), n // B)
    memb_one = (ids[None, :] == jnp.arange(B)[:, None]).astype(F32)   # (B, n)
    memb = jnp.stack([memb_one, memb_one])                            # (2, B, n)

    def make_adj(k, m):
        a = (jax.random.uniform(k, (n, n)) < 0.4).astype(F32)
        a = jnp.maximum(a, a.T) * (1.0 - jnp.eye(n, dtype=F32))       # undirected
        return a * (m.T @ m)                   # keep only within-graph edges

    def normalize(a):
        # DGL norm='both': D^-1/2 A D^-1/2 with degrees clamped to >= 1
        d = jnp.clip(a.sum(axis=1), 1.0, None)
        dinv = 1.0 / jnp.sqrt(d)
        return dinv[:, None] * a * dinv[None, :]

    a_hat = jnp.stack([normalize(make_adj(keys[0], memb_one)),
                       normalize(make_adj(keys[1], memb_one))])       # (2, n, n)
    x = jnp.stack([jax.random.normal(keys[2], (n, nfeat), F32),
                   jax.random.normal(keys[3], (n, nfeat), F32)])      # (2, n, nfeat)

    params = init_params(keys[4], nfeat, nhid, nclass)

    out = jax.jit(forward)(params, a_hat, x, memb)
    out = jax.block_until_ready(out)
    assert out.shape == (B, 1), out.shape
    print("KERNEL_OK")
</pallas_src>

<mosaic_0001>
module attributes {stable_mosaic.version = 11 : i64} {
  func.func @_mynewgcn_kernel(%arg0: memref<2x16x16xbf16, #tpu.memory_space<vmem>>, %arg1: memref<2x16x16xbf16, #tpu.memory_space<vmem>>, %arg2: memref<2x2x16xf32, #tpu.memory_space<vmem>>, %arg3: memref<16x16xf32, #tpu.memory_space<vmem>>, %arg4: memref<2x16x32xbf16, #tpu.memory_space<vmem>>, %arg5: memref<2x1x32xf32, #tpu.memory_space<vmem>>, %arg6: memref<2x32x8xbf16, #tpu.memory_space<vmem>>, %arg7: memref<2x1x8xf32, #tpu.memory_space<vmem>>, %arg8: memref<4x16x16xbf16, #tpu.memory_space<vmem>>, %arg9: memref<4x16x16xbf16, #tpu.memory_space<vmem>>, %arg10: memref<4x1x16xf32, #tpu.memory_space<vmem>>, %arg11: memref<4x16x16xbf16, #tpu.memory_space<vmem>>, %arg12: memref<1x16xf32, #tpu.memory_space<vmem>>, %arg13: memref<16x8xbf16, #tpu.memory_space<vmem>>, %arg14: memref<1x8xf32, #tpu.memory_space<vmem>>, %arg15: memref<8x1xbf16, #tpu.memory_space<vmem>>, %arg16: memref<1x1xf32, #tpu.memory_space<vmem>>, %arg17: memref<2x1xf32, #tpu.memory_space<vmem>>) attributes {dimension_semantics = [], scalar_prefetch = 0 : i64, scratch_operands = 0 : i64, tpu.core_type = #tpu.core_type<tc>} {
    %c0 = arith.constant 0 : index
    %c0_0 = arith.constant 0 : index
    %c0_1 = arith.constant 0 : index
    %0 = vector.load %arg0[%c0, %c0_0, %c0_1] : memref<2x16x16xbf16, #tpu.memory_space<vmem>>, vector<1x16x16xbf16>
    %1 = vector.shape_cast %0 : vector<1x16x16xbf16> to vector<16x16xbf16>
    %c0_2 = arith.constant 0 : index
    %c0_3 = arith.constant 0 : index
    %c0_4 = arith.constant 0 : index
    %2 = vector.load %arg1[%c0_2, %c0_3, %c0_4] : memref<2x16x16xbf16, #tpu.memory_space<vmem>>, vector<1x16x16xbf16>
    %3 = vector.shape_cast %2 : vector<1x16x16xbf16> to vector<16x16xbf16>
    %c0_5 = arith.constant 0 : index
    %c0_6 = arith.constant 0 : index
    %c0_7 = arith.constant 0 : index
    %4 = vector.load %arg4[%c0_5, %c0_6, %c0_7] : memref<2x16x32xbf16, #tpu.memory_space<vmem>>, vector<1x16x32xbf16>
    %5 = vector.shape_cast %4 : vector<1x16x32xbf16> to vector<16x32xbf16>
    %cst = arith.constant dense<0.000000e+00> : vector<16x32xf32>
    %6 = tpu.matmul %3, %5, %cst {dimension_numbers = #tpu.dot_dimension_numbers<[1], [0], [0], [1], [0, 0, 1, 1], [], []>} : vector<16x16xbf16>, vector<16x32xbf16>, vector<16x32xf32> -> vector<16x32xf32>
    %7 = arith.truncf %6 : vector<16x32xf32> to vector<16x32xbf16>
    %cst_8 = arith.constant dense<0.000000e+00> : vector<16x32xf32>
    %8 = tpu.matmul %1, %7, %cst_8 {dimension_numbers = #tpu.dot_dimension_numbers<[1], [0], [0], [1], [0, 0, 1, 1], [], []>} : vector<16x16xbf16>, vector<16x32xbf16>, vector<16x32xf32> -> vector<16x32xf32>
    %c0_9 = arith.constant 0 : index
    %c0_10 = arith.constant 0 : index
    %c0_11 = arith.constant 0 : index
    %9 = vector.load %arg5[%c0_9, %c0_10, %c0_11] : memref<2x1x32xf32, #tpu.memory_space<vmem>>, vector<1x1x32xf32>
    %10 = vector.shape_cast %9 : vector<1x1x32xf32> to vector<1x32xf32>
    %11 = vector.broadcast %10 : vector<1x32xf32> to vector<16x32xf32>
    %12 = arith.addf %8, %11 : vector<16x32xf32>
    %cst_12 = arith.constant 0.000000e+00 : f32
    %13 = vector.broadcast %cst_12 : f32 to vector<16x32xf32>
    %14 = arith.maximumf %12, %13 : vector<16x32xf32>
    %15 = arith.truncf %14 : vector<16x32xf32> to vector<16x32xbf16>
    %c0_13 = arith.constant 0 : index
    %c0_14 = arith.constant 0 : index
    %c0_15 = arith.constant 0 : index
    %16 = vector.load %arg6[%c0_13, %c0_14, %c0_15] : memref<2x32x8xbf16, #tpu.memory_space<vmem>>, vector<1x32x8xbf16>
    %17 = vector.shape_cast %16 : vector<1x32x8xbf16> to vector<32x8xbf16>
    %cst_16 = arith.constant dense<0.000000e+00> : vector<16x8xf32>
    %18 = tpu.matmul %15, %17, %cst_16 {dimension_numbers = #tpu.dot_dimension_numbers<[1], [0], [0], [1], [0, 0, 1, 1], [], []>} : vector<16x32xbf16>, vector<32x8xbf16>, vector<16x8xf32> -> vector<16x8xf32>
    %19 = arith.truncf %18 : vector<16x8xf32> to vector<16x8xbf16>
    %cst_17 = arith.constant dense<0.000000e+00> : vector<16x8xf32>
    %20 = tpu.matmul %1, %19, %cst_17 {dimension_numbers = #tpu.dot_dimension_numbers<[1], [0], [0], [1], [0, 0, 1, 1], [], []>} : vector<16x16xbf16>, vector<16x8xbf16>, vector<16x8xf32> -> vector<16x8xf32>
    %c0_18 = arith.constant 0 : index
    %c0_19 = arith.constant 0 : index
    %c0_20 = arith.constant 0 : index
    %21 = vector.load %arg7[%c0_18, %c0_19, %c0_20] : memref<2x1x8xf32, #tpu.memory_space<vmem>>, vector<1x1x8xf32>
    %22 = vector.shape_cast %21 : vector<1x1x8xf32> to vector<1x8xf32>
    %23 = vector.broadcast %22 : vector<1x8xf32> to vector<16x8xf32>
    %24 = arith.addf %20, %23 : vector<16x8xf32>
    %c1 = arith.constant 1 : index
    %c0_21 = arith.constant 0 : index
    %c0_22 = arith.constant 0 : index
    %25 = vector.load %arg0[%c1, %c0_21, %c0_22] : memref<2x16x16xbf16, #tpu.memory_space<vmem>>, vector<1x16x16xbf16>
    %26 = vector.shape_cast %25 : vector<1x16x16xbf16> to vector<16x16xbf16>
    %c1_23 = arith.constant 1 : index
    %c0_24 = arith.constant 0 : index
    %c0_25 = arith.constant 0 : index
    %27 = vector.load %arg1[%c1_23, %c0_24, %c0_25] : memref<2x16x16xbf16, #tpu.memory_space<vmem>>, vector<1x16x16xbf16>
    %28 = vector.shape_cast %27 : vector<1x16x16xbf16> to vector<16x16xbf16>
    %c1_26 = arith.constant 1 : index
    %c0_27 = arith.constant 0 : index
    %c0_28 = arith.constant 0 : index
    %29 = vector.load %arg4[%c1_26, %c0_27, %c0_28] : memref<2x16x32xbf16, #tpu.memory_space<vmem>>, vector<1x16x32xbf16>
    %30 = vector.shape_cast %29 : vector<1x16x32xbf16> to vector<16x32xbf16>
    %cst_29 = arith.constant dense<0.000000e+00> : vector<16x32xf32>
    %31 = tpu.matmul %28, %30, %cst_29 {dimension_numbers = #tpu.dot_dimension_numbers<[1], [0], [0], [1], [0, 0, 1, 1], [], []>} : vector<16x16xbf16>, vector<16x32xbf16>, vector<16x32xf32> -> vector<16x32xf32>
    %32 = arith.truncf %31 : vector<16x32xf32> to vector<16x32xbf16>
    %cst_30 = arith.constant dense<0.000000e+00> : vector<16x32xf32>
    %33 = tpu.matmul %26, %32, %cst_30 {dimension_numbers = #tpu.dot_dimension_numbers<[1], [0], [0], [1], [0, 0, 1, 1], [], []>} : vector<16x16xbf16>, vector<16x32xbf16>, vector<16x32xf32> -> vector<16x32xf32>
    %c1_31 = arith.constant 1 : index
    %c0_32 = arith.constant 0 : index
    %c0_33 = arith.constant 0 : index
    %34 = vector.load %arg5[%c1_31, %c0_32, %c0_33] : memref<2x1x32xf32, #tpu.memory_space<vmem>>, vector<1x1x32xf32>
    %35 = vector.shape_cast %34 : vector<1x1x32xf32> to vector<1x32xf32>
    %36 = vector.broadcast %35 : vector<1x32xf32> to vector<16x32xf32>
    %37 = arith.addf %33, %36 : vector<16x32xf32>
    %cst_34 = arith.constant 0.000000e+00 : f32
    %38 = vector.broadcast %cst_34 : f32 to vector<16x32xf32>
    %39 = arith.maximumf %37, %38 : vector<16x32xf32>
    %40 = arith.truncf %39 : vector<16x32xf32> to vector<16x32xbf16>
    %c1_35 = arith.constant 1 : index
    %c0_36 = arith.constant 0 : index
    %c0_37 = arith.constant 0 : index
    %41 = vector.load %arg6[%c1_35, %c0_36, %c0_37] : memref<2x32x8xbf16, #tpu.memory_space<vmem>>, vector<1x32x8xbf16>
    %42 = vector.shape_cast %41 : vector<1x32x8xbf16> to vector<32x8xbf16>
    %cst_38 = arith.constant dense<0.000000e+00> : vector<16x8xf32>
    %43 = tpu.matmul %40, %42, %cst_38 {dimension_numbers = #tpu.dot_dimension_numbers<[1], [0], [0], [1], [0, 0, 1, 1], [], []>} : vector<16x32xbf16>, vector<32x8xbf16>, vector<16x8xf32> -> vector<16x8xf32>
    %44 = arith.truncf %43 : vector<16x8xf32> to vector<16x8xbf16>
    %cst_39 = arith.constant dense<0.000000e+00> : vector<16x8xf32>
    %45 = tpu.matmul %26, %44, %cst_39 {dimension_numbers = #tpu.dot_dimension_numbers<[1], [0], [0], [1], [0, 0, 1, 1], [], []>} : vector<16x16xbf16>, vector<16x8xbf16>, vector<16x8xf32> -> vector<16x8xf32>
    %c1_40 = arith.constant 1 : index
    %c0_41 = arith.constant 0 : index
    %c0_42 = arith.constant 0 : index
    %46 = vector.load %arg7[%c1_40, %c0_41, %c0_42] : memref<2x1x8xf32, #tpu.memory_space<vmem>>, vector<1x1x8xf32>
    %47 = vector.shape_cast %46 : vector<1x1x8xf32> to vector<1x8xf32>
    %48 = vector.broadcast %47 : vector<1x8xf32> to vector<16x8xf32>
    %49 = arith.addf %45, %48 : vector<16x8xf32>
    %50 = arith.truncf %24 : vector<16x8xf32> to vector<16x8xbf16>
    %51 = arith.truncf %49 : vector<16x8xf32> to vector<16x8xbf16>
    %cst_43 = arith.constant dense<0.000000e+00> : vector<16x16xf32>
    %52 = tpu.matmul %50, %51, %cst_43 {dimension_numbers = #tpu.dot_dimension_numbers<[1], [1], [0], [0], [0, 0, 1, 0], [], []>} : vector<16x8xbf16>, vector<16x8xbf16>, vector<16x16xf32> -> vector<16x16xf32>
    %53 = math.tanh %52 : vector<16x16xf32>
    %c0_44 = arith.constant 0 : index
    %c0_45 = arith.constant 0 : index
    %54 = vector.load %arg3[%c0_44, %c0_45] : memref<16x16xf32, #tpu.memory_space<vmem>>, vector<16x16xf32>
    %55 = arith.mulf %53, %54 : vector<16x16xf32>
    %56 = arith.truncf %55 : vector<16x16xf32> to vector<16x16xbf16>
    %cst_46 = arith.constant dense<0.000000e+00> : vector<16x8xf32>
    %57 = tpu.matmul %56, %51, %cst_46 {dimension_numbers = #tpu.dot_dimension_numbers<[1], [0], [0], [1], [0, 0, 1, 1], [], []>} : vector<16x16xbf16>, vector<16x8xbf16>, vector<16x8xf32> -> vector<16x8xf32>
    %cst_47 = arith.constant dense<0.000000e+00> : vector<16x8xf32>
    %58 = tpu.matmul %56, %50, %cst_47 {dimension_numbers = #tpu.dot_dimension_numbers<[0], [0], [1], [1], [0, 1, 1, 1], [], []>} : vector<16x16xbf16>, vector<16x8xbf16>, vector<16x8xf32> -> vector<16x8xf32>
    %59 = tpu.concatenate %24, %57 in 1 : vector<16x8xf32>, vector<16x8xf32> -> vector<16x16xf32>
    %60 = arith.truncf %59 : vector<16x16xf32> to vector<16x16xbf16>
    %61 = tpu.concatenate %49, %58 in 1 : vector<16x8xf32>, vector<16x8xf32> -> vector<16x16xf32>
    %62 = arith.truncf %61 : vector<16x16xf32> to vector<16x16xbf16>
    %c0_48 = arith.constant 0 : index
    %c0_49 = arith.constant 0 : index
    %c0_50 = arith.constant 0 : index
    %63 = vector.load %arg2[%c0_48, %c0_49, %c0_50] : memref<2x2x16xf32, #tpu.memory_space<vmem>>, vector<1x2x16xf32>
    %64 = vector.shape_cast %63 : vector<1x2x16xf32> to vector<2x16xf32>
    %c1_51 = arith.constant 1 : index
    %c0_52 = arith.constant 0 : index
    %c0_53 = arith.constant 0 : index
    %65 = vector.load %arg2[%c1_51, %c0_52, %c0_53] : memref<2x2x16xf32, #tpu.memory_space<vmem>>, vector<1x2x16xf32>
    %66 = vector.shape_cast %65 : vector<1x2x16xf32> to vector<2x16xf32>
    %cst_54 = arith.constant 0.000000e+00 : f32
    %67 = vector.broadcast %cst_54 : f32 to vector<2x16xf32>
    %68 = arith.cmpf ogt, %64, %67 : vector<2x16xf32>
    %cst_55 = arith.constant 0.000000e+00 : f32
    %69 = vector.broadcast %cst_55 : f32 to vector<2x16xf32>
    %70 = arith.cmpf ogt, %66, %69 : vector<2x16xf32>
    %cst_56 = arith.constant 0.000000e+00 : f32
    %71 = vector.broadcast %cst_56 : f32 to vector<4x16xf32>
    %cst_57 = arith.constant 0.000000e+00 : f32
    %72 = vector.broadcast %cst_57 : f32 to vector<4x16xf32>
    %cst_58 = arith.constant 0.000000e+00 : f32
    %73 = vector.broadcast %cst_58 : f32 to vector<4x16xf32>
    %74 = arith.truncf %71 : vector<4x16xf32> to vector<4x16xbf16>
    %75 = arith.truncf %73 : vector<4x16xf32> to vector<4x16xbf16>
    %c0_59 = arith.constant 0 : index
    %c0_60 = arith.constant 0 : index
    %c0_61 = arith.constant 0 : index
    %76 = vector.load %arg8[%c0_59, %c0_60, %c0_61] : memref<4x16x16xbf16, #tpu.memory_space<vmem>>, vector<1x16x16xbf16>
    %77 = vector.shape_cast %76 : vector<1x16x16xbf16> to vector<16x16xbf16>
    %cst_62 = arith.constant dense<0.000000e+00> : vector<4x16xf32>
    %78 = tpu.matmul %74, %77, %cst_62 {dimension_numbers = #tpu.dot_dimension_numbers<[1], [0], [0], [1], [0, 0, 1, 1], [], []>} : vector<4x16xbf16>, vector<16x16xbf16>, vector<4x16xf32> -> vector<4x16xf32>
    %c0_63 = arith.constant 0 : index
    %c0_64 = arith.constant 0 : index
    %c0_65 = arith.constant 0 : index
    %79 = vector.load %arg9[%c0_63, %c0_64, %c0_65] : memref<4x16x16xbf16, #tpu.memory_space<vmem>>, vector<1x16x16xbf16>
    %80 = vector.shape_cast %79 : vector<1x16x16xbf16> to vector<16x16xbf16>
    %cst_66 = arith.constant dense<0.000000e+00> : vector<4x16xf32>
    %81 = tpu.matmul %75, %80, %cst_66 {dimension_numbers = #tpu.dot_dimension_numbers<[1], [0], [0], [1], [0, 0, 1, 1], [], []>} : vector<4x16xbf16>, vector<16x16xbf16>, vector<4x16xf32> -> vector<4x16xf32>
    %82 = arith.addf %78, %81 : vector<4x16xf32>
    %c0_67 = arith.constant 0 : index
    %c0_68 = arith.constant 0 : index
    %c0_69 = arith.constant 0 : index
    %83 = vector.load %arg10[%c0_67, %c0_68, %c0_69] : memref<4x1x16xf32, #tpu.memory_space<vmem>>, vector<1x1x16xf32>
    %84 = vector.shape_cast %83 : vector<1x1x16xf32> to vector<1x16xf32>
    %85 = vector.broadcast %84 : vector<1x16xf32> to vector<4x16xf32>
    %86 = arith.addf %82, %85 : vector<4x16xf32>
    %c1_70 = arith.constant 1 : index
    %c0_71 = arith.constant 0 : index
    %c0_72 = arith.constant 0 : index
    %87 = vector.load %arg8[%c1_70, %c0_71, %c0_72] : memref<4x16x16xbf16, #tpu.memory_space<vmem>>, vector<1x16x16xbf16>
    %88 = vector.shape_cast %87 : vector<1x16x16xbf16> to vector<16x16xbf16>
    %cst_73 = arith.constant dense<0.000000e+00> : vector<4x16xf32>
    %89 = tpu.matmul %74, %88, %cst_73 {dimension_numbers = #tpu.dot_dimension_numbers<[1], [0], [0], [1], [0, 0, 1, 1], [], []>} : vector<4x16xbf16>, vector<16x16xbf16>, vector<4x16xf32> -> vector<4x16xf32>
    %c1_74 = arith.constant 1 : index
    %c0_75 = arith.constant 0 : index
    %c0_76 = arith.constant 0 : index
    %90 = vector.load %arg9[%c1_74, %c0_75, %c0_76] : memref<4x16x16xbf16, #tpu.memory_space<vmem>>, vector<1x16x16xbf16>
    %91 = vector.shape_cast %90 : vector<1x16x16xbf16> to vector<16x16xbf16>
    %cst_77 = arith.constant dense<0.000000e+00> : vector<4x16xf32>
    %92 = tpu.matmul %75, %91, %cst_77 {dimension_numbers = #tpu.dot_dimension_numbers<[1], [0], [0], [1], [0, 0, 1, 1], [], []>} : vector<4x16xbf16>, vector<16x16xbf16>, vector<4x16xf32> -> vector<4x16xf32>
    %93 = arith.addf %89, %92 : vector<4x16xf32>
    %c1_78 = arith.constant 1 : index
    %c0_79 = arith.constant 0 : index
    %c0_80 = arith.constant 0 : index
    %94 = vector.load %arg10[%c1_78, %c0_79, %c0_80] : memref<4x1x16xf32, #tpu.memory_space<vmem>>, vector<1x1x16xf32>
    %95 = vector.shape_cast %94 : vector<1x1x16xf32> to vector<1x16xf32>
    %96 = vector.broadcast %95 : vector<1x16xf32> to vector<4x16xf32>
    %97 = arith.addf %93, %96 : vector<4x16xf32>
    %c2 = arith.constant 2 : index
    %c0_81 = arith.constant 0 : index
    %c0_82 = arith.constant 0 : index
    %98 = vector.load %arg8[%c2, %c0_81, %c0_82] : memref<4x16x16xbf16, #tpu.memory_space<vmem>>, vector<1x16x16xbf16>
    %99 = vector.shape_cast %98 : vector<1x16x16xbf16> to vector<16x16xbf16>
    %cst_83 = arith.constant dense<0.000000e+00> : vector<4x16xf32>
    %100 = tpu.matmul %74, %99, %cst_83 {dimension_numbers = #tpu.dot_dimension_numbers<[1], [0], [0], [1], [0, 0, 1, 1], [], []>} : vector<4x16xbf16>, vector<16x16xbf16>, vector<4x16xf32> -> vector<4x16xf32>
    %c2_84 = arith.constant 2 : index
    %c0_85 = arith.constant 0 : index
    %c0_86 = arith.constant 0 : index
    %101 = vector.load %arg9[%c2_84, %c0_85, %c0_86] : memref<4x16x16xbf16, #tpu.memory_space<vmem>>, vector<1x16x16xbf16>
    %102 = vector.shape_cast %101 : vector<1x16x16xbf16> to vector<16x16xbf16>
    %cst_87 = arith.constant dense<0.000000e+00> : vector<4x16xf32>
    %103 = tpu.matmul %75, %102, %cst_87 {dimension_numbers = #tpu.dot_dimension_numbers<[1], [0], [0], [1], [0, 0, 1, 1], [], []>} : vector<4x16xbf16>, vector<16x16xbf16>, vector<4x16xf32> -> vector<4x16xf32>
    %104 = arith.addf %100, %103 : vector<4x16xf32>
    %c2_88 = arith.constant 2 : index
    %c0_89 = arith.constant 0 : index
    %c0_90 = arith.constant 0 : index
    %105 = vector.load %arg10[%c2_88, %c0_89, %c0_90] : memref<4x1x16xf32, #tpu.memory_space<vmem>>, vector<1x1x16xf32>
    %106 = vector.shape_cast %105 : vector<1x1x16xf32> to vector<1x16xf32>
    %107 = vector.broadcast %106 : vector<1x16xf32> to vector<4x16xf32>
    %108 = arith.addf %104, %107 : vector<4x16xf32>
    %c3 = arith.constant 3 : index
    %c0_91 = arith.constant 0 : index
    %c0_92 = arith.constant 0 : index
    %109 = vector.load %arg8[%c3, %c0_91, %c0_92] : memref<4x16x16xbf16, #tpu.memory_space<vmem>>, vector<1x16x16xbf16>
    %110 = vector.shape_cast %109 : vector<1x16x16xbf16> to vector<16x16xbf16>
    %cst_93 = arith.constant dense<0.000000e+00> : vector<4x16xf32>
    %111 = tpu.matmul %74, %110, %cst_93 {dimension_numbers = #tpu.dot_dimension_numbers<[1], [0], [0], [1], [0, 0, 1, 1], [], []>} : vector<4x16xbf16>, vector<16x16xbf16>, vector<4x16xf32> -> vector<4x16xf32>
    %c3_94 = arith.constant 3 : index
    %c0_95 = arith.constant 0 : index
    %c0_96 = arith.constant 0 : index
    %112 = vector.load %arg9[%c3_94, %c0_95, %c0_96] : memref<4x16x16xbf16, #tpu.memory_space<vmem>>, vector<1x16x16xbf16>
    %113 = vector.shape_cast %112 : vector<1x16x16xbf16> to vector<16x16xbf16>
    %cst_97 = arith.constant dense<0.000000e+00> : vector<4x16xf32>
    %114 = tpu.matmul %75, %113, %cst_97 {dimension_numbers = #tpu.dot_dimension_numbers<[1], [0], [0], [1], [0, 0, 1, 1], [], []>} : vector<4x16xbf16>, vector<16x16xbf16>, vector<4x16xf32> -> vector<4x16xf32>
    %115 = arith.addf %111, %114 : vector<4x16xf32>
    %c3_98 = arith.constant 3 : index
    %c0_99 = arith.constant 0 : index
    %c0_100 = arith.constant 0 : index
    %116 = vector.load %arg10[%c3_98, %c0_99, %c0_100] : memref<4x1x16xf32, #tpu.memory_space<vmem>>, vector<1x1x16xf32>
    %117 = vector.shape_cast %116 : vector<1x1x16xf32> to vector<1x16xf32>
    %118 = vector.broadcast %117 : vector<1x16xf32> to vector<4x16xf32>
    %119 = arith.addf %115, %118 : vector<4x16xf32>
    %cst_101 = arith.constant 0.000000e+00 : f32
    %120 = vector.broadcast %cst_101 : f32 to vector<4x16xf32>
    %121 = arith.subf %120, %86 : vector<4x16xf32>
    %122 = math.exp %121 : vector<4x16xf32>
    %cst_102 = arith.constant 1.000000e+00 : f32
    %123 = vector.broadcast %cst_102 : f32 to vector<4x16xf32>
    %124 = arith.addf %123, %122 : vector<4x16xf32>
    %125 = tpu.reciprocal %124 {approx = true} : vector<4x16xf32> -> vector<4x16xf32>
    %126 = arith.mulf %124, %125 : vector<4x16xf32>
    %cst_103 = arith.constant 2.000000e+00 : f32
    %127 = vector.broadcast %cst_103 : f32 to vector<4x16xf32>
    %128 = arith.subf %127, %126 : vector<4x16xf32>
    %129 = arith.mulf %125, %128 : vector<4x16xf32>
    %cst_104 = arith.constant 0.000000e+00 : f32
    %130 = vector.broadcast %cst_104 : f32 to vector<4x16xf32>
    %131 = arith.subf %130, %97 : vector<4x16xf32>
    %132 = math.exp %131 : vector<4x16xf32>
    %cst_105 = arith.constant 1.000000e+00 : f32
    %133 = vector.broadcast %cst_105 : f32 to vector<4x16xf32>
    %134 = arith.addf %133, %132 : vector<4x16xf32>
    %135 = tpu.reciprocal %134 {approx = true} : vector<4x16xf32> -> vector<4x16xf32>
    %136 = arith.mulf %134, %135 : vector<4x16xf32>
    %cst_106 = arith.constant 2.000000e+00 : f32
    %137 = vector.broadcast %cst_106 : f32 to vector<4x16xf32>
    %138 = arith.subf %137, %136 : vector<4x16xf32>
    %139 = arith.mulf %135, %138 : vector<4x16xf32>
    %140 = math.tanh %108 : vector<4x16xf32>
    %cst_107 = arith.constant 0.000000e+00 : f32
    %141 = vector.broadcast %cst_107 : f32 to vector<4x16xf32>
    %142 = arith.subf %141, %119 : vector<4x16xf32>
    %143 = math.exp %142 : vector<4x16xf32>
    %cst_108 = arith.constant 1.000000e+00 : f32
    %144 = vector.broadcast %cst_108 : f32 to vector<4x16xf32>
    %145 = arith.addf %144, %143 : vector<4x16xf32>
    %146 = tpu.reciprocal %145 {approx = true} : vector<4x16xf32> -> vector<4x16xf32>
    %147 = arith.mulf %145, %146 : vector<4x16xf32>
    %cst_109 = arith.constant 2.000000e+00 : f32
    %148 = vector.broadcast %cst_109 : f32 to vector<4x16xf32>
    %149 = arith.subf %148, %147 : vector<4x16xf32>
    %150 = arith.mulf %146, %149 : vector<4x16xf32>
    %151 = arith.mulf %139, %72 : vector<4x16xf32>
    %152 = arith.mulf %129, %140 : vector<4x16xf32>
    %153 = arith.addf %151, %152 : vector<4x16xf32>
    %154 = math.tanh %153 : vector<4x16xf32>
    %155 = arith.mulf %150, %154 : vector<4x16xf32>
    %156 = vector.extract_strided_slice %155 {offsets = [0, 0], sizes = [2, 16], strides = [1, 1]} : vector<4x16xf32> to vector<2x16xf32>
    %157 = arith.truncf %156 : vector<2x16xf32> to vector<2x16xbf16>
    %cst_110 = arith.constant dense<0.000000e+00> : vector<2x16xf32>
    %158 = tpu.matmul %157, %60, %cst_110 {dimension_numbers = #tpu.dot_dimension_numbers<[1], [1], [0], [0], [0, 0, 1, 0], [], []>} : vector<2x16xbf16>, vector<16x16xbf16>, vector<2x16xf32> -> vector<2x16xf32>
    %cst_111 = arith.constant -1.000000e+30 : f32
    %159 = vector.broadcast %cst_111 : f32 to vector<2x16xf32>
    %160 = arith.select %68, %158, %159 : vector<2x16xi1>, vector<2x16xf32>
    %cst_112 = arith.constant dense<0xFF800000> : vector<2xf32>
    %161 = vector.multi_reduction <maximumf>, %160, %cst_112 [1] : vector<2x16xf32> to vector<2xf32>
    %162 = vector.shape_cast %161 : vector<2xf32> to vector<2x1xf32>
    %163 = vector.broadcast %162 : vector<2x1xf32> to vector<2x16xf32>
    %164 = arith.subf %160, %163 : vector<2x16xf32>
    %165 = math.exp %164 : vector<2x16xf32>
    %166 = arith.mulf %165, %64 : vector<2x16xf32>
    %cst_113 = arith.constant dense<0.000000e+00> : vector<2xf32>
    %167 = vector.multi_reduction <add>, %166, %cst_113 [1] : vector<2x16xf32> to vector<2xf32>
    %168 = vector.shape_cast %167 : vector<2xf32> to vector<2x1xf32>
    %cst_114 = arith.constant 9.99999968E-21 : f32
    %169 = vector.broadcast %cst_114 : f32 to vector<2x1xf32>
    %170 = arith.maximumf %168, %169 : vector<2x1xf32>
    %171 = tpu.reciprocal %170 {approx = true} : vector<2x1xf32> -> vector<2x1xf32>
    %172 = arith.mulf %170, %171 : vector<2x1xf32>
    %cst_115 = arith.constant 2.000000e+00 : f32
    %173 = vector.broadcast %cst_115 : f32 to vector<2x1xf32>
    %174 = arith.subf %173, %172 : vector<2x1xf32>
    %175 = arith.mulf %171, %174 : vector<2x1xf32>
    %176 = vector.broadcast %175 : vector<2x1xf32> to vector<2x16xf32>
    %177 = arith.mulf %166, %176 : vector<2x16xf32>
    %178 = arith.truncf %177 : vector<2x16xf32> to vector<2x16xbf16>
    %cst_116 = arith.constant dense<0.000000e+00> : vector<2x16xf32>
    %179 = tpu.matmul %178, %60, %cst_116 {dimension_numbers = #tpu.dot_dimension_numbers<[1], [0], [0], [1], [0, 0, 1, 1], [], []>} : vector<2x16xbf16>, vector<16x16xbf16>, vector<2x16xf32> -> vector<2x16xf32>
    %180 = vector.extract_strided_slice %155 {offsets = [2, 0], sizes = [2, 16], strides = [1, 1]} : vector<4x16xf32> to vector<2x16xf32>
    %181 = arith.truncf %180 : vector<2x16xf32> to vector<2x16xbf16>
    %cst_117 = arith.constant dense<0.000000e+00> : vector<2x16xf32>
    %182 = tpu.matmul %181, %62, %cst_117 {dimension_numbers = #tpu.dot_dimension_numbers<[1], [1], [0], [0], [0, 0, 1, 0], [], []>} : vector<2x16xbf16>, vector<16x16xbf16>, vector<2x16xf32> -> vector<2x16xf32>
    %cst_118 = arith.constant -1.000000e+30 : f32
    %183 = vector.broadcast %cst_118 : f32 to vector<2x16xf32>
    %184 = arith.select %70, %182, %183 : vector<2x16xi1>, vector<2x16xf32>
    %cst_119 = arith.constant dense<0xFF800000> : vector<2xf32>
    %185 = vector.multi_reduction <maximumf>, %184, %cst_119 [1] : vector<2x16xf32> to vector<2xf32>
    %186 = vector.shape_cast %185 : vector<2xf32> to vector<2x1xf32>
    %187 = vector.broadcast %186 : vector<2x1xf32> to vector<2x16xf32>
    %188 = arith.subf %184, %187 : vector<2x16xf32>
    %189 = math.exp %188 : vector<2x16xf32>
    %190 = arith.mulf %189, %66 : vector<2x16xf32>
    %cst_120 = arith.constant dense<0.000000e+00> : vector<2xf32>
    %191 = vector.multi_reduction <add>, %190, %cst_120 [1] : vector<2x16xf32> to vector<2xf32>
    %192 = vector.shape_cast %191 : vector<2xf32> to vector<2x1xf32>
    %cst_121 = arith.constant 9.99999968E-21 : f32
    %193 = vector.broadcast %cst_121 : f32 to vector<2x1xf32>
    %194 = arith.maximumf %192, %193 : vector<2x1xf32>
    %195 = tpu.reciprocal %194 {approx = true} : vector<2x1xf32> -> vector<2x1xf32>
    %196 = arith.mulf %194, %195 : vector<2x1xf32>
    %cst_122 = arith.constant 2.000000e+00 : f32
    %197 = vector.broadcast %cst_122 : f32 to vector<2x1xf32>
    %198 = arith.subf %197, %196 : vector<2x1xf32>
    %199 = arith.mulf %195, %198 : vector<2x1xf32>
    %200 = vector.broadcast %199 : vector<2x1xf32> to vector<2x16xf32>
    %201 = arith.mulf %190, %200 : vector<2x16xf32>
    %202 = arith.truncf %201 : vector<2x16xf32> to vector<2x16xbf16>
    %cst_123 = arith.constant dense<0.000000e+00> : vector<2x16xf32>
    %203 = tpu.matmul %202, %62, %cst_123 {dimension_numbers = #tpu.dot_dimension_numbers<[1], [0], [0], [1], [0, 0, 1, 1], [], []>} : vector<2x16xbf16>, vector<16x16xbf16>, vector<2x16xf32> -> vector<2x16xf32>
    %204 = tpu.concatenate %179, %203 in 0 : vector<2x16xf32>, vector<2x16xf32> -> vector<4x16xf32>
    %205 = arith.truncf %155 : vector<4x16xf32> to vector<4x16xbf16>
    %206 = arith.truncf %204 : vector<4x16xf32> to vector<4x16xbf16>
    %c0_124 = arith.constant 0 : index
    %c0_125 = arith.constant 0 : index
    %c0_126 = arith.constant 0 : index
    %207 = vector.load %arg8[%c0_124, %c0_125, %c0_126] : memref<4x16x16xbf16, #tpu.memory_space<vmem>>, vector<1x16x16xbf16>
    %208 = vector.shape_cast %207 : vector<1x16x16xbf16> to vector<16x16xbf16>
    %cst_127 = arith.constant dense<0.000000e+00> : vector<4x16xf32>
    %209 = tpu.matmul %205, %208, %cst_127 {dimension_numbers = #tpu.dot_dimension_numbers<[1], [0], [0], [1], [0, 0, 1, 1], [], []>} : vector<4x16xbf16>, vector<16x16xbf16>, vector<4x16xf32> -> vector<4x16xf32>
    %c0_128 = arith.constant 0 : index
    %c0_129 = arith.constant 0 : index
    %c0_130 = arith.constant 0 : index
    %210 = vector.load %arg9[%c0_128, %c0_129, %c0_130] : memref<4x16x16xbf16, #tpu.memory_space<vmem>>, vector<1x16x16xbf16>
    %211 = vector.shape_cast %210 : vector<1x16x16xbf16> to vector<16x16xbf16>
    %cst_131 = arith.constant dense<0.000000e+00> : vector<4x16xf32>
    %212 = tpu.matmul %206, %211, %cst_131 {dimension_numbers = #tpu.dot_dimension_numbers<[1], [0], [0], [1], [0, 0, 1, 1], [], []>} : vector<4x16xbf16>, vector<16x16xbf16>, vector<4x16xf32> -> vector<4x16xf32>
    %213 = arith.addf %209, %212 : vector<4x16xf32>
    %c0_132 = arith.constant 0 : index
    %c0_133 = arith.constant 0 : index
    %c0_134 = arith.constant 0 : index
    %214 = vector.load %arg10[%c0_132, %c0_133, %c0_134] : memref<4x1x16xf32, #tpu.memory_space<vmem>>, vector<1x1x16xf32>
    %215 = vector.shape_cast %214 : vector<1x1x16xf32> to vector<1x16xf32>
    %216 = vector.broadcast %215 : vector<1x16xf32> to vector<4x16xf32>
    %217 = arith.addf %213, %216 : vector<4x16xf32>
    %c1_135 = arith.constant 1 : index
    %c0_136 = arith.constant 0 : index
    %c0_137 = arith.constant 0 : index
    %218 = vector.load %arg8[%c1_135, %c0_136, %c0_137] : memref<4x16x16xbf16, #tpu.memory_space<vmem>>, vector<1x16x16xbf16>
    %219 = vector.shape_cast %218 : vector<1x16x16xbf16> to vector<16x16xbf16>
    %cst_138 = arith.constant dense<0.000000e+00> : vector<4x16xf32>
    %220 = tpu.matmul %205, %219, %cst_138 {dimension_numbers = #tpu.dot_dimension_numbers<[1], [0], [0], [1], [0, 0, 1, 1], [], []>} : vector<4x16xbf16>, vector<16x16xbf16>, vector<4x16xf32> -> vector<4x16xf32>
    %c1_139 = arith.constant 1 : index
    %c0_140 = arith.constant 0 : index
    %c0_141 = arith.constant 0 : index
    %221 = vector.load %arg9[%c1_139, %c0_140, %c0_141] : memref<4x16x16xbf16, #tpu.memory_space<vmem>>, vector<1x16x16xbf16>
    %222 = vector.shape_cast %221 : vector<1x16x16xbf16> to vector<16x16xbf16>
    %cst_142 = arith.constant dense<0.000000e+00> : vector<4x16xf32>
    %223 = tpu.matmul %206, %222, %cst_142 {dimension_numbers = #tpu.dot_dimension_numbers<[1], [0], [0], [1], [0, 0, 1, 1], [], []>} : vector<4x16xbf16>, vector<16x16xbf16>, vector<4x16xf32> -> vector<4x16xf32>
    %224 = arith.addf %220, %223 : vector<4x16xf32>
    %c1_143 = arith.constant 1 : index
    %c0_144 = arith.constant 0 : index
    %c0_145 = arith.constant 0 : index
    %225 = vector.load %arg10[%c1_143, %c0_144, %c0_145] : memref<4x1x16xf32, #tpu.memory_space<vmem>>, vector<1x1x16xf32>
    %226 = vector.shape_cast %225 : vector<1x1x16xf32> to vector<1x16xf32>
    %227 = vector.broadcast %226 : vector<1x16xf32> to vector<4x16xf32>
    %228 = arith.addf %224, %227 : vector<4x16xf32>
    %c2_146 = arith.constant 2 : index
    %c0_147 = arith.constant 0 : index
    %c0_148 = arith.constant 0 : index
    %229 = vector.load %arg8[%c2_146, %c0_147, %c0_148] : memref<4x16x16xbf16, #tpu.memory_space<vmem>>, vector<1x16x16xbf16>
    %230 = vector.shape_cast %229 : vector<1x16x16xbf16> to vector<16x16xbf16>
    %cst_149 = arith.constant dense<0.000000e+00> : vector<4x16xf32>
    %231 = tpu.matmul %205, %230, %cst_149 {dimension_numbers = #tpu.dot_dimension_numbers<[1], [0], [0], [1], [0, 0, 1, 1], [], []>} : vector<4x16xbf16>, vector<16x16xbf16>, vector<4x16xf32> -> vector<4x16xf32>
    %c2_150 = arith.constant 2 : index
    %c0_151 = arith.constant 0 : index
    %c0_152 = arith.constant 0 : index
    %232 = vector.load %arg9[%c2_150, %c0_151, %c0_152] : memref<4x16x16xbf16, #tpu.memory_space<vmem>>, vector<1x16x16xbf16>
    %233 = vector.shape_cast %232 : vector<1x16x16xbf16> to vector<16x16xbf16>
    %cst_153 = arith.constant dense<0.000000e+00> : vector<4x16xf32>
    %234 = tpu.matmul %206, %233, %cst_153 {dimension_numbers = #tpu.dot_dimension_numbers<[1], [0], [0], [1], [0, 0, 1, 1], [], []>} : vector<4x16xbf16>, vector<16x16xbf16>, vector<4x16xf32> -> vector<4x16xf32>
    %235 = arith.addf %231, %234 : vector<4x16xf32>
    %c2_154 = arith.constant 2 : index
    %c0_155 = arith.constant 0 : index
    %c0_156 = arith.constant 0 : index
    %236 = vector.load %arg10[%c2_154, %c0_155, %c0_156] : memref<4x1x16xf32, #tpu.memory_space<vmem>>, vector<1x1x16xf32>
    %237 = vector.shape_cast %236 : vector<1x1x16xf32> to vector<1x16xf32>
    %238 = vector.broadcast %237 : vector<1x16xf32> to vector<4x16xf32>
    %239 = arith.addf %235, %238 : vector<4x16xf32>
    %c3_157 = arith.constant 3 : index
    %c0_158 = arith.constant 0 : index
    %c0_159 = arith.constant 0 : index
    %240 = vector.load %arg8[%c3_157, %c0_158, %c0_159] : memref<4x16x16xbf16, #tpu.memory_space<vmem>>, vector<1x16x16xbf16>
    %241 = vector.shape_cast %240 : vector<1x16x16xbf16> to vector<16x16xbf16>
    %cst_160 = arith.constant dense<0.000000e+00> : vector<4x16xf32>
    %242 = tpu.matmul %205, %241, %cst_160 {dimension_numbers = #tpu.dot_dimension_numbers<[1], [0], [0], [1], [0, 0, 1, 1], [], []>} : vector<4x16xbf16>, vector<16x16xbf16>, vector<4x16xf32> -> vector<4x16xf32>
    %c3_161 = arith.constant 3 : index
    %c0_162 = arith.constant 0 : index
    %c0_163 = arith.constant 0 : index
    %243 = vector.load %arg9[%c3_161, %c0_162, %c0_163] : memref<4x16x16xbf16, #tpu.memory_space<vmem>>, vector<1x16x16xbf16>
    %244 = vector.shape_cast %243 : vector<1x16x16xbf16> to vector<16x16xbf16>
    %cst_164 = arith.constant dense<0.000000e+00> : vector<4x16xf32>
    %245 = tpu.matmul %206, %244, %cst_164 {dimension_numbers = #tpu.dot_dimension_numbers<[1], [0], [0], [1], [0, 0, 1, 1], [], []>} : vector<4x16xbf16>, vector<16x16xbf16>, vector<4x16xf32> -> vector<4x16xf32>
    %246 = arith.addf %242, %245 : vector<4x16xf32>
    %c3_165 = arith.constant 3 : index
    %c0_166 = arith.constant 0 : index
    %c0_167 = arith.constant 0 : index
    %247 = vector.load %arg10[%c3_165, %c0_166, %c0_167] : memref<4x1x16xf32, #tpu.memory_space<vmem>>, vector<1x1x16xf32>
    %248 = vector.shape_cast %247 : vector<1x1x16xf32> to vector<1x16xf32>
    %249 = vector.broadcast %248 : vector<1x16xf32> to vector<4x16xf32>
    %250 = arith.addf %246, %249 : vector<4x16xf32>
    %cst_168 = arith.constant 0.000000e+00 : f32
    %251 = vector.broadcast %cst_168 : f32 to vector<4x16xf32>
    %252 = arith.subf %251, %217 : vector<4x16xf32>
    %253 = math.exp %252 : vector<4x16xf32>
    %cst_169 = arith.constant 1.000000e+00 : f32
    %254 = vector.broadcast %cst_169 : f32 to vector<4x16xf32>
    %255 = arith.addf %254, %253 : vector<4x16xf32>
    %256 = tpu.reciprocal %255 {approx = true} : vector<4x16xf32> -> vector<4x16xf32>
    %257 = arith.mulf %255, %256 : vector<4x16xf32>
    %cst_170 = arith.constant 2.000000e+00 : f32
    %258 = vector.broadcast %cst_170 : f32 to vector<4x16xf32>
    %259 = arith.subf %258, %257 : vector<4x16xf32>
    %260 = arith.mulf %256, %259 : vector<4x16xf32>
    %cst_171 = arith.constant 0.000000e+00 : f32
    %261 = vector.broadcast %cst_171 : f32 to vector<4x16xf32>
    %262 = arith.subf %261, %228 : vector<4x16xf32>
    %263 = math.exp %262 : vector<4x16xf32>
    %cst_172 = arith.constant 1.000000e+00 : f32
    %264 = vector.broadcast %cst_172 : f32 to vector<4x16xf32>
    %265 = arith.addf %264, %263 : vector<4x16xf32>
    %266 = tpu.reciprocal %265 {approx = true} : vector<4x16xf32> -> vector<4x16xf32>
    %267 = arith.mulf %265, %266 : vector<4x16xf32>
    %cst_173 = arith.constant 2.000000e+00 : f32
    %268 = vector.broadcast %cst_173 : f32 to vector<4x16xf32>
    %269 = arith.subf %268, %267 : vector<4x16xf32>
    %270 = arith.mulf %266, %269 : vector<4x16xf32>
    %271 = math.tanh %239 : vector<4x16xf32>
    %cst_174 = arith.constant 0.000000e+00 : f32
    %272 = vector.broadcast %cst_174 : f32 to vector<4x16xf32>
    %273 = arith.subf %272, %250 : vector<4x16xf32>
    %274 = math.exp %273 : vector<4x16xf32>
    %cst_175 = arith.constant 1.000000e+00 : f32
    %275 = vector.broadcast %cst_175 : f32 to vector<4x16xf32>
    %276 = arith.addf %275, %274 : vector<4x16xf32>
    %277 = tpu.reciprocal %276 {approx = true} : vector<4x16xf32> -> vector<4x16xf32>
    %278 = arith.mulf %276, %277 : vector<4x16xf32>
    %cst_176 = arith.constant 2.000000e+00 : f32
    %279 = vector.broadcast %cst_176 : f32 to vector<4x16xf32>
    %280 = arith.subf %279, %278 : vector<4x16xf32>
    %281 = arith.mulf %277, %280 : vector<4x16xf32>
    %282 = arith.mulf %270, %153 : vector<4x16xf32>
    %283 = arith.mulf %260, %271 : vector<4x16xf32>
    %284 = arith.addf %282, %283 : vector<4x16xf32>
    %285 = math.tanh %284 : vector<4x16xf32>
    %286 = arith.mulf %281, %285 : vector<4x16xf32>
    %287 = vector.extract_strided_slice %286 {offsets = [0, 0], sizes = [2, 16], strides = [1, 1]} : vector<4x16xf32> to vector<2x16xf32>
    %288 = arith.truncf %287 : vector<2x16xf32> to vector<2x16xbf16>
    %cst_177 = arith.constant dense<0.000000e+00> : vector<2x16xf32>
    %289 = tpu.matmul %288, %60, %cst_177 {dimension_numbers = #tpu.dot_dimension_numbers<[1], [1], [0], [0], [0, 0, 1, 0], [], []>} : vector<2x16xbf16>, vector<16x16xbf16>, vector<2x16xf32> -> vector<2x16xf32>
    %cst_178 = arith.constant -1.000000e+30 : f32
    %290 = vector.broadcast %cst_178 : f32 to vector<2x16xf32>
    %291 = arith.select %68, %289, %290 : vector<2x16xi1>, vector<2x16xf32>
    %cst_179 = arith.constant dense<0xFF800000> : vector<2xf32>
    %292 = vector.multi_reduction <maximumf>, %291, %cst_179 [1] : vector<2x16xf32> to vector<2xf32>
    %293 = vector.shape_cast %292 : vector<2xf32> to vector<2x1xf32>
    %294 = vector.broadcast %293 : vector<2x1xf32> to vector<2x16xf32>
    %295 = arith.subf %291, %294 : vector<2x16xf32>
    %296 = math.exp %295 : vector<2x16xf32>
    %297 = arith.mulf %296, %64 : vector<2x16xf32>
    %cst_180 = arith.constant dense<0.000000e+00> : vector<2xf32>
    %298 = vector.multi_reduction <add>, %297, %cst_180 [1] : vector<2x16xf32> to vector<2xf32>
    %299 = vector.shape_cast %298 : vector<2xf32> to vector<2x1xf32>
    %cst_181 = arith.constant 9.99999968E-21 : f32
    %300 = vector.broadcast %cst_181 : f32 to vector<2x1xf32>
    %301 = arith.maximumf %299, %300 : vector<2x1xf32>
    %302 = tpu.reciprocal %301 {approx = true} : vector<2x1xf32> -> vector<2x1xf32>
    %303 = arith.mulf %301, %302 : vector<2x1xf32>
    %cst_182 = arith.constant 2.000000e+00 : f32
    %304 = vector.broadcast %cst_182 : f32 to vector<2x1xf32>
    %305 = arith.subf %304, %303 : vector<2x1xf32>
    %306 = arith.mulf %302, %305 : vector<2x1xf32>
    %307 = vector.broadcast %306 : vector<2x1xf32> to vector<2x16xf32>
    %308 = arith.mulf %297, %307 : vector<2x16xf32>
    %309 = arith.truncf %308 : vector<2x16xf32> to vector<2x16xbf16>
    %cst_183 = arith.constant dense<0.000000e+00> : vector<2x16xf32>
    %310 = tpu.matmul %309, %60, %cst_183 {dimension_numbers = #tpu.dot_dimension_numbers<[1], [0], [0], [1], [0, 0, 1, 1], [], []>} : vector<2x16xbf16>, vector<16x16xbf16>, vector<2x16xf32> -> vector<2x16xf32>
    %311 = vector.extract_strided_slice %286 {offsets = [2, 0], sizes = [2, 16], strides = [1, 1]} : vector<4x16xf32> to vector<2x16xf32>
    %312 = arith.truncf %311 : vector<2x16xf32> to vector<2x16xbf16>
    %cst_184 = arith.constant dense<0.000000e+00> : vector<2x16xf32>
    %313 = tpu.matmul %312, %62, %cst_184 {dimension_numbers = #tpu.dot_dimension_numbers<[1], [1], [0], [0], [0, 0, 1, 0], [], []>} : vector<2x16xbf16>, vector<16x16xbf16>, vector<2x16xf32> -> vector<2x16xf32>
    %cst_185 = arith.constant -1.000000e+30 : f32
    %314 = vector.broadcast %cst_185 : f32 to vector<2x16xf32>
    %315 = arith.select %70, %313, %314 : vector<2x16xi1>, vector<2x16xf32>
    %cst_186 = arith.constant dense<0xFF800000> : vector<2xf32>
    %316 = vector.multi_reduction <maximumf>, %315, %cst_186 [1] : vector<2x16xf32> to vector<2xf32>
    %317 = vector.shape_cast %316 : vector<2xf32> to vector<2x1xf32>
    %318 = vector.broadcast %317 : vector<2x1xf32> to vector<2x16xf32>
    %319 = arith.subf %315, %318 : vector<2x16xf32>
    %320 = math.exp %319 : vector<2x16xf32>
    %321 = arith.mulf %320, %66 : vector<2x16xf32>
    %cst_187 = arith.constant dense<0.000000e+00> : vector<2xf32>
    %322 = vector.multi_reduction <add>, %321, %cst_187 [1] : vector<2x16xf32> to vector<2xf32>
    %323 = vector.shape_cast %322 : vector<2xf32> to vector<2x1xf32>
    %cst_188 = arith.constant 9.99999968E-21 : f32
    %324 = vector.broadcast %cst_188 : f32 to vector<2x1xf32>
    %325 = arith.maximumf %323, %324 : vector<2x1xf32>
    %326 = tpu.reciprocal %325 {approx = true} : vector<2x1xf32> -> vector<2x1xf32>
    %327 = arith.mulf %325, %326 : vector<2x1xf32>
    %cst_189 = arith.constant 2.000000e+00 : f32
    %328 = vector.broadcast %cst_189 : f32 to vector<2x1xf32>
    %329 = arith.subf %328, %327 : vector<2x1xf32>
    %330 = arith.mulf %326, %329 : vector<2x1xf32>
    %331 = vector.broadcast %330 : vector<2x1xf32> to vector<2x16xf32>
    %332 = arith.mulf %321, %331 : vector<2x16xf32>
    %333 = arith.truncf %332 : vector<2x16xf32> to vector<2x16xbf16>
    %cst_190 = arith.constant dense<0.000000e+00> : vector<2x16xf32>
    %334 = tpu.matmul %333, %62, %cst_190 {dimension_numbers = #tpu.dot_dimension_numbers<[1], [0], [0], [1], [0, 0, 1, 1], [], []>} : vector<2x16xbf16>, vector<16x16xbf16>, vector<2x16xf32> -> vector<2x16xf32>
    %335 = tpu.concatenate %310, %334 in 0 : vector<2x16xf32>, vector<2x16xf32> -> vector<4x16xf32>
    %336 = vector.extract_strided_slice %286 {offsets = [0, 0], sizes = [2, 16], strides = [1, 1]} : vector<4x16xf32> to vector<2x16xf32>
    %337 = vector.extract_strided_slice %335 {offsets = [0, 0], sizes = [2, 16], strides = [1, 1]} : vector<4x16xf32> to vector<2x16xf32>
    %338 = vector.extract_strided_slice %286 {offsets = [2, 0], sizes = [2, 16], strides = [1, 1]} : vector<4x16xf32> to vector<2x16xf32>
    %339 = vector.extract_strided_slice %335 {offsets = [2, 0], sizes = [2, 16], strides = [1, 1]} : vector<4x16xf32> to vector<2x16xf32>
    %c0_191 = arith.constant 0 : index
    %c0_192 = arith.constant 0 : index
    %340 = vector.load %arg12[%c0_191, %c0_192] : memref<1x16xf32, #tpu.memory_space<vmem>>, vector<1x16xf32>
    %341 = arith.truncf %336 : vector<2x16xf32> to vector<2x16xbf16>
    %c0_193 = arith.constant 0 : index
    %c0_194 = arith.constant 0 : index
    %c0_195 = arith.constant 0 : index
    %342 = vector.load %arg11[%c0_193, %c0_194, %c0_195] : memref<4x16x16xbf16, #tpu.memory_space<vmem>>, vector<1x16x16xbf16>
    %343 = vector.shape_cast %342 : vector<1x16x16xbf16> to vector<16x16xbf16>
    %cst_196 = arith.constant dense<0.000000e+00> : vector<2x16xf32>
    %344 = tpu.matmul %341, %343, %cst_196 {dimension_numbers = #tpu.dot_dimension_numbers<[1], [0], [0], [1], [0, 0, 1, 1], [], []>} : vector<2x16xbf16>, vector<16x16xbf16>, vector<2x16xf32> -> vector<2x16xf32>
    %345 = vector.broadcast %340 : vector<1x16xf32> to vector<2x16xf32>
    %346 = arith.addf %345, %344 : vector<2x16xf32>
    %347 = arith.truncf %337 : vector<2x16xf32> to vector<2x16xbf16>
    %c1_197 = arith.constant 1 : index
    %c0_198 = arith.constant 0 : index
    %c0_199 = arith.constant 0 : index
    %348 = vector.load %arg11[%c1_197, %c0_198, %c0_199] : memref<4x16x16xbf16, #tpu.memory_space<vmem>>, vector<1x16x16xbf16>
    %349 = vector.shape_cast %348 : vector<1x16x16xbf16> to vector<16x16xbf16>
    %cst_200 = arith.constant dense<0.000000e+00> : vector<2x16xf32>
    %350 = tpu.matmul %347, %349, %cst_200 {dimension_numbers = #tpu.dot_dimension_numbers<[1], [0], [0], [1], [0, 0, 1, 1], [], []>} : vector<2x16xbf16>, vector<16x16xbf16>, vector<2x16xf32> -> vector<2x16xf32>
    %351 = arith.addf %346, %350 : vector<2x16xf32>
    %352 = arith.truncf %338 : vector<2x16xf32> to vector<2x16xbf16>
    %c2_201 = arith.constant 2 : index
    %c0_202 = arith.constant 0 : index
    %c0_203 = arith.constant 0 : index
    %353 = vector.load %arg11[%c2_201, %c0_202, %c0_203] : memref<4x16x16xbf16, #tpu.memory_space<vmem>>, vector<1x16x16xbf16>
    %354 = vector.shape_cast %353 : vector<1x16x16xbf16> to vector<16x16xbf16>
    %cst_204 = arith.constant dense<0.000000e+00> : vector<2x16xf32>
    %355 = tpu.matmul %352, %354, %cst_204 {dimension_numbers = #tpu.dot_dimension_numbers<[1], [0], [0], [1], [0, 0, 1, 1], [], []>} : vector<2x16xbf16>, vector<16x16xbf16>, vector<2x16xf32> -> vector<2x16xf32>
    %356 = arith.addf %351, %355 : vector<2x16xf32>
    %357 = arith.truncf %339 : vector<2x16xf32> to vector<2x16xbf16>
    %c3_205 = arith.constant 3 : index
    %c0_206 = arith.constant 0 : index
    %c0_207 = arith.constant 0 : index
    %358 = vector.load %arg11[%c3_205, %c0_206, %c0_207] : memref<4x16x16xbf16, #tpu.memory_space<vmem>>, vector<1x16x16xbf16>
    %359 = vector.shape_cast %358 : vector<1x16x16xbf16> to vector<16x16xbf16>
    %cst_208 = arith.constant dense<0.000000e+00> : vector<2x16xf32>
    %360 = tpu.matmul %357, %359, %cst_208 {dimension_numbers = #tpu.dot_dimension_numbers<[1], [0], [0], [1], [0, 0, 1, 1], [], []>} : vector<2x16xbf16>, vector<16x16xbf16>, vector<2x16xf32> -> vector<2x16xf32>
    %361 = arith.addf %356, %360 : vector<2x16xf32>
    %cst_209 = arith.constant 0.000000e+00 : f32
    %362 = vector.broadcast %cst_209 : f32 to vector<2x16xf32>
    %363 = arith.maximumf %361, %362 : vector<2x16xf32>
    %364 = arith.truncf %363 : vector<2x16xf32> to vector<2x16xbf16>
    %c0_210 = arith.constant 0 : index
    %c0_211 = arith.constant 0 : index
    %365 = vector.load %arg13[%c0_210, %c0_211] : memref<16x8xbf16, #tpu.memory_space<vmem>>, vector<16x8xbf16>
    %cst_212 = arith.constant dense<0.000000e+00> : vector<2x8xf32>
    %366 = tpu.matmul %364, %365, %cst_212 {dimension_numbers = #tpu.dot_dimension_numbers<[1], [0], [0], [1], [0, 0, 1, 1], [], []>} : vector<2x16xbf16>, vector<16x8xbf16>, vector<2x8xf32> -> vector<2x8xf32>
    %c0_213 = arith.constant 0 : index
    %c0_214 = arith.constant 0 : index
    %367 = vector.load %arg14[%c0_213, %c0_214] : memref<1x8xf32, #tpu.memory_space<vmem>>, vector<1x8xf32>
    %368 = vector.broadcast %367 : vector<1x8xf32> to vector<2x8xf32>
    %369 = arith.addf %366, %368 : vector<2x8xf32>
    %cst_215 = arith.constant 0.000000e+00 : f32
    %370 = vector.broadcast %cst_215 : f32 to vector<2x8xf32>
    %371 = arith.maximumf %369, %370 : vector<2x8xf32>
    %372 = arith.truncf %371 : vector<2x8xf32> to vector<2x8xbf16>
    %c0_216 = arith.constant 0 : index
    %c0_217 = arith.constant 0 : index
    %373 = vector.load %arg15[%c0_216, %c0_217] : memref<8x1xbf16, #tpu.memory_space<vmem>>, vector<8x1xbf16>
    %cst_218 = arith.constant dense<0.000000e+00> : vector<2x1xf32>
    %374 = tpu.matmul %372, %373, %cst_218 {dimension_numbers = #tpu.dot_dimension_numbers<[1], [0], [0], [1], [0, 0, 1, 1], [], []>} : vector<2x8xbf16>, vector<8x1xbf16>, vector<2x1xf32> -> vector<2x1xf32>
    %c0_219 = arith.constant 0 : index
    %c0_220 = arith.constant 0 : index
    %375 = vector.load %arg16[%c0_219, %c0_220] : memref<1x1xf32, #tpu.memory_space<vmem>>, vector<1x1xf32>
    %376 = vector.broadcast %375 : vector<1x1xf32> to vector<2x1xf32>
    %377 = arith.addf %374, %376 : vector<2x1xf32>
    %c0_221 = arith.constant 0 : index
    %c0_222 = arith.constant 0 : index
    %378 = vector.load %arg17[%c0_221, %c0_222] : memref<2x1xf32, #tpu.memory_space<vmem>>, vector<2x1xf32>
    tpu.vector_store %arg17[%c0_221, %c0_222], %377 {strides = array<i32>} : memref<2x1xf32, #tpu.memory_space<vmem>>, vector<2x1xf32>,
    return
  }
}

</mosaic_0001>

<bundles_post_ra>
// kernel: forward.1
= control target key start
LH: loop header
LB: loop body
LE: loop exit
PB: predicated region body
PF: predicated region fallthrough
CT: control target
= control target key end

     0   :  { %s3412_s0 = inlined_call_operand.vmem [shape: bf16[2,16,16], index: 0, kind: input, shape index: {}]   ;;  %s3413_s1 = inlined_call_operand.vmem [shape: bf16[2,16,16], index: 1, kind: input, shape index: {}]   ;;  %s3414_s2 = inlined_call_operand.vmem [shape: f32[2,2,16], index: 2, kind: input, shape index: {}]   ;;  %s3415_s3 = inlined_call_operand.vmem [shape: f32[16,16], index: 3, kind: input, shape index: {}]   ;;  %s3416_s4 = inlined_call_operand.vmem [shape: bf16[2,16,32], index: 4, kind: input, shape index: {}]   ;;  %s3417_s5 = inlined_call_operand.vmem [shape: f32[2,1,32], index: 5, kind: input, shape index: {}]   ;;  %s3418_s6 = inlined_call_operand.vmem [shape: bf16[2,32,8], index: 6, kind: input, shape index: {}]   ;;  %s3419_s7 = inlined_call_operand.vmem [shape: f32[2,1,8], index: 7, kind: input, shape index: {}]   ;;  %s3420_s8 = inlined_call_operand.vmem [shape: bf16[4,16,16], index: 8, kind: input, shape index: {}]   ;;  %s3421_s9 = inlined_call_operand.vmem [shape: bf16[4,16,16], index: 9, kind: input, shape index: {}]   ;;  %s3422_s10 = inlined_call_operand.vmem [shape: f32[4,1,16], index: 10, kind: input, shape index: {}]   ;;  %s3423_s11 = inlined_call_operand.vmem [shape: bf16[4,16,16], index: 11, kind: input, shape index: {}]   ;;  %s3424_s12 = inlined_call_operand.hbm [shape: f32[1,16], index: 12, kind: input, shape index: {}]   ;;  %s3425_s13 = inlined_call_operand.vmem [shape: bf16[16,8], index: 13, kind: input, shape index: {}]   ;;  %s3426_s14 = inlined_call_operand.hbm [shape: f32[1,8], index: 14, kind: input, shape index: {}]   ;;  %s3427_s15 = inlined_call_operand.vmem [shape: bf16[8,1], index: 15, kind: input, shape index: {}]   ;;  %s3428_s16 = inlined_call_operand.<no memory space> [shape: f32[1,1], index: 16, kind: input, shape index: {}]   ;;  %s3429_s17 = inlined_call_operand.vmem [shape: f32[2,1], index: 17, kind: output, shape index: {}]  }
   0x1   :  { %3432 = sst [smem:[#allocation9_spill]] %s3412_s0  ;;  %v22_v0 = vstv %s3428_s16 }
   0x2   :  { %3433 = sst [smem:[#allocation10_spill]] %s3413_s1  ;;  %23 = vst [vmem:[#allocation2] sm:$0x1] %v22_v0 }
   0x3   :  { %24 = vsyncpa [#allocation4], 0 }
   0x4   :  { %25 = vsyncpa [#allocation6], 0  ;;  %s2903_s26 = smov [#allocation3]   ;;  %s2904_s28 = smov [#allocation5]  }
   0x5   :  { %s56_s27 = sshll.u32 %s2903_s26, 4  ;;  %s68_s29 = sshll.u32 %s2904_s28, 4  ;;  %s57_s27 = int_to_ptr.vmem [resolvable:$true] %s56_s27  ;;  %s69_s29 = int_to_ptr.vmem [resolvable:$true] %s68_s29 }
   0x6   :  { %s2867_s0 = scalar_lea.vmem %s57_s27, 16  ;;  %s2871_s30 = scalar_lea.vmem %s57_s27, 32 }
   0x7   :  { %p2868_p0 = scmp.ne.s32.totalorder %s57_s27, %s2867_s0  ;;  %p2872_p1 = scmp.lt.s32.totalorder %s57_s27, %s57_s27 }
   0x8   :  { %p2873_p2 = scmp.lt.s32.totalorder %s2871_s30, %s2867_s0 }
   0xa   :  { %p2874_p3 = por %p2873_p2, %p2872_p1 }
   0xc   :  { %p2875_p4 = pnand %p2874_p3, %p2868_p0 }
   0xe   :  { %2878 = shalt.err (!%p2875_p4)
}
   0xf   :  { %59 = dma.hbm_to_vmem [thread:$0]  %s3424_s12, 16, %s57_s27, [#allocation4]  }
  0x10   :  { %s2887_s16 = scalar_lea.vmem %s69_s29, 16  ;;  %s2891_s1 = scalar_lea.vmem %s69_s29, 32 }
  0x11   :  { %p2888_p5 = scmp.ne.s32.totalorder %s69_s29, %s2887_s16  ;;  %p2892_p6 = scmp.lt.s32.totalorder %s69_s29, %s69_s29 }
  0x12   :  { %p2893_p7 = scmp.lt.s32.totalorder %s2891_s1, %s2887_s16 }
  0x14   :  { %p2894_p8 = por %p2893_p7, %p2892_p6 }
  0x16   :  { %p2895_p9 = pnand %p2894_p8, %p2888_p5 }
  0x18   :  { %2898 = shalt.err (!%p2895_p9)
}
  0x19   :  { %71 = dma.hbm_to_vmem [thread:$0]  %s3426_s14, 16, %s69_s29, [#allocation6]  }
  0x1a   :  { %2899 = dma.done.wait [#allocation4], 16  }
  0x1b   :  { %2900 = vsyncadd [#allocation4], 4294967280 }
  0x1c   :  { %2901 = dma.done.wait [#allocation6], 16  }
  0x1d   :  { %2902 = vsyncadd [#allocation6], 4294967280  ;;  %v2905_v1 = vmov 0.0   ;;  %vm2906_vm0 = vmmov 0   ;;  %v2784_v2 = vld [vmem:[%s3416_s4] sm:$0xff]   ;;  %s3434_s24 = sld [smem:[#allocation10_spill]] }
  0x1e   :  { %2518 = vmatprep.subr.bf16.mxu0 %v2905_v1  ;;  %2520 = vmatprep.mubr.msk.bf16.mxu0 %vm2906_vm0, %v2905_v1  ;;  %vm100_vm1 = vcmask 130048   ;;  %s3435_s27 = sld [smem:[#allocation9_spill]]  ;;  %v2787_v10 = vld [vmem:[%s3418_s6 + $0x8] sm:$0xff]   ;;  %v2788_v11 = vld [vmem:[%s3418_s6] sm:$0xff]   ;;  %vm221_vm2 = vcmask 261120   ;;  %v2792_v35 = vld [vmem:[%s3418_s6 + $0x18] sm:$0xff]  }
  0x1f   :  { %2524 = vmatprep.subr.bf16.mxu1 %v2905_v1  ;;  %2526 = vmatprep.mubr.msk.bf16.mxu1 %vm2906_vm0, %v2905_v1  ;;  %v2336_v12 = vld [vmem:[%s3417_s5] ss:$0 sm:$0xff]  ;;  %v2789_v21 = vld [vmem:[%s3416_s4 + $0x8] sm:$0xff]   ;;  %v2793_v36 = vld [vmem:[%s3418_s6 + $0x10] sm:$0xff]   ;;  %vm553_vm3 = vcmask 64512   ;;  %vm1245_vm5 = vcmask 123904  }
  0x20   :  { %2519 = vmatpush3.bf16.msra.mxu0 %v2784_v2  ;;  %v2354_v41 = vld [vmem:[%s3417_s5 + $0x1] ss:$0 sm:$0xff]  ;;  %v2342_v2 = vld [vmem:[%s3419_s7] ss:$0 sm:$0xff]  ;;  %s2908_s5 = smov 8   ;;  %vm1418_vm7 = vcmask 1041408  }
  0x21   :  { %2530 = vmatprep.subr.bf16.mxu0 %v2905_v1  ;;  %v2365_v57 = vld [vmem:[%s3419_s7 + $0x1] ss:$0 sm:$0xff]  ;;  %vm2281_vm8 = vcmask 1043456   ;;  %vm2325_vm9 = vcmask 1024  }
  0x23   :  { %v2785_v3 = vld [vmem:[%s3434_s24] sm:$0xff]   ;;  %v2790_v23 = vld [vmem:[%s3434_s24 + $0x8] sm:$0xff]  }
  0x24   :  { %2521 = vmatmul.mubr.msk.bf16.vlgmr.msra.gmra.mxu0 %vm100_vm1, %v2785_v3  ;;  %v2786_v9 = vld [vmem:[%s3435_s27] sm:$0xff]   ;;  %v2791_v34 = vld [vmem:[%s3435_s27 + $0x8] sm:$0xff]  }
  0x25   :  { %2534 = vmatprep.mubr.msk.bf16.mxu0 %vm2906_vm0, %v2905_v1  ;;  %2531 = vmatpush3.bf16.msra.mxu0 %v2787_v10 }
  0x26   :  { %2532 = vmatprep.subr.bf16.mxu0 %v2905_v1 }
  0x29   :  { %2533 = vmatpush3.bf16.msra.mxu0 %v2788_v11  ;;  %v603_v11 = vld [vmem:[%s3415_s3] sm:$0xff] }
  0x2a   :  { %2544 = vmatprep.subr.bf16.mxu0 %v2905_v1 }
  0xe4   :  { %v138_v4 = vpop.f32.mrf.mxu0 }
  0xe6   :  { %v2522_v5 = vpop.f32.mrf.mxu0 }
  0xe8   :  { %v141_v6 = vpop.f32.mrf.mxu0 }
  0xe9   :  { %v145_v7 = vpack.c.bf16 %v141_v6, %v138_v4 }
  0xea   :  { %v2523_v8 = vpop.f32.mrf.mxu0 }
  0xeb   :  { %2525 = vmatpush3.bf16.msra.mxu1 %v145_v7 }
  0xec   :  { %2538 = vmatprep.subr.bf16.mxu1 %v2905_v1 }
  0xee   :  { %2527 = vmatmul.mubr.msk.bf16.vlgmr.msra.gmra.mxu1 %vm100_vm1, %v2786_v9 }
  0xef   :  { %2540 = vmatprep.mubr.msk.bf16.mxu1 %vm2906_vm0, %v2905_v1 }
 0x1ae   :  { %v195_v13 = vpop.f32.mrf.mxu1 }
 0x1af   :  { %v196_v15 = vadd.f32 %v2336_v12, %v195_v13 }
 0x1b0   :  { %v2528_v14 = vpop.f32.mrf.mxu1 }
 0x1b1   :  { %v202_v19 = vmax.f32 %v196_v15, 0.0 }
 0x1b2   :  { %v198_v16 = vpop.f32.mrf.mxu1 }
 0x1b3   :  { %v199_v17 = vadd.f32 %v2336_v12, %v198_v16  ;;  %v604_v12 = vld [vmem:[%s3415_s3 + $0x8] sm:$0xff]  ;;  %v3118_v16 = vld [vmem:[%s3421_s9] sm:$0xff]  }
 0x1b4   :  { %v2529_v18 = vpop.f32.mrf.mxu1 }
 0x1b5   :  { %v203_v20 = vmax.f32 %v199_v17, 0.0  ;;  %v3128_v18 = vld [vmem:[%s3421_s9 + $0x8] sm:$0xff]  }
 0x1b7   :  { %v204_v22 = vpack.c.bf16 %v203_v20, %v202_v19  ;;  %v2907_v19 = vmov 0   ;;  %v3137_v20 = vld [vmem:[%s3421_s9 + $0x10] sm:$0xff]  }
 0x1b9   :  { %2535 = vmatmul.mubr.msk.bf16.vlgmr.msra.gmra.mxu0 %vm221_vm2, %v204_v22  ;;  %v3157_v22 = vld [vmem:[%s3420_s8] sm:$0xff]  }
 0x1ba   :  { %2545 = vmatpush3.bf16.msra.mxu0 %v2789_v21  ;;  %2546 = vmatprep.mubr.msk.bf16.mxu0 %vm2906_vm0, %v2905_v1  ;;  %v3146_v21 = vld [vmem:[%s3421_s9 + $0x18] sm:$0xff]  }
 0x1bb   :  { %2556 = vmatprep.subr.bf16.mxu0 %v2905_v1 }
 0x1c1   :  { %2547 = vmatmul.mubr.msk.bf16.vlgmr.msra.gmra.mxu0 %vm100_vm1, %v2790_v23 }
 0x1c2   :  { %2560 = vmatprep.mubr.msk.bf16.mxu0 %vm2906_vm0, %v2905_v1  ;;  %2557 = vmatpush3.bf16.msra.mxu0 %v2792_v35 }
 0x1c3   :  { %2558 = vmatprep.subr.bf16.mxu0 %v2905_v1 }
 0x1c6   :  { %2559 = vmatpush3.bf16.msra.mxu0 %v2793_v36 }
 0x1c7   :  { %2570 = vmatprep.subr.bf16.mxu0 %v2905_v1 }
 0x279   :  { %v259_v24 = vpop.f32.mrf.mxu0 }
 0x27b   :  { %v2536_v25 = vpop.f32.mrf.mxu0 }
 0x27c   :  { %v3176_v25 = vld [vmem:[%s3420_s8 + $0x10] sm:$0xff]  }
 0x27d   :  { %v262_v26 = vpop.f32.mrf.mxu0 }
 0x27e   :  { %v266_v27 = vpack.c.bf16 %v262_v26, %v259_v24  ;;  %v3167_v24 = vld [vmem:[%s3420_s8 + $0x8] sm:$0xff]   ;;  %v3185_v26 = vld [vmem:[%s3420_s8 + $0x18] sm:$0xff]  }
 0x27f   :  { %v2537_v28 = vpop.f32.mrf.mxu0 }
 0x280   :  { %2539 = vmatpush3.bf16.msra.mxu1 %v266_v27 }
 0x281   :  { %v372_v29 = vpop.f32.mrf.mxu0  ;;  %2550 = vmatprep.subr.bf16.mxu1 %v2905_v1 }
 0x283   :  { %2541 = vmatmul.mubr.msk.bf16.vlgmr.msra.gmra.mxu1 %vm100_vm1, %v2786_v9  ;;  %v2548_v30 = vpop.f32.mrf.mxu0 }
 0x284   :  { %2552 = vmatprep.mubr.msk.bf16.mxu1 %vm2906_vm0, %v2905_v1 }
 0x285   :  { %v375_v31 = vpop.f32.mrf.mxu0 }
 0x286   :  { %v379_v32 = vpack.c.bf16 %v375_v31, %v372_v29 }
 0x287   :  { %v2549_v33 = vpop.f32.mrf.mxu0 }
 0x288   :  { %2551 = vmatpush3.bf16.msra.mxu1 %v379_v32 }
 0x289   :  { %2564 = vmatprep.subr.bf16.mxu1 %v2905_v1 }
 0x28b   :  { %2553 = vmatmul.mubr.msk.bf16.vlgmr.msra.gmra.mxu1 %vm100_vm1, %v2791_v34 }
 0x28c   :  { %2566 = vmatprep.mubr.msk.bf16.mxu1 %vm2906_vm0, %v2905_v1 }
 0x343   :  { %v308_v37 = vpop.f32.mrf.mxu1 }
 0x344   :  { %v3101_v4 = vadd.f32 %v2342_v2, %v308_v37 }
 0x345   :  { %v2542_v38 = vpop.f32.mrf.mxu1 }
 0x347   :  { %v311_v39 = vpop.f32.mrf.mxu1 }
 0x348   :  { %v3098_v3 = vadd.f32 %v2342_v2, %v311_v39  ;;  %v3202_v2 = vld [vmem:[%s3422_s10 + $0x1] ss:$0 sm:$0xff] }
 0x349   :  { %v2543_v40 = vpop.f32.mrf.mxu1 }
 0x34a   :  { %v551_v5 = vpack.c.bf16 %v3098_v3, %v3101_v4 }
 0x34b   :  { %v430_v42 = vpop.f32.mrf.mxu1 }
 0x34c   :  { %v431_v44 = vadd.f32 %v2354_v41, %v430_v42 }
 0x34d   :  { %v2554_v43 = vpop.f32.mrf.mxu1 }
 0x34e   :  { %v437_v48 = vmax.f32 %v431_v44, 0.0 }
 0x34f   :  { %v433_v45 = vpop.f32.mrf.mxu1 }
 0x350   :  { %v434_v46 = vadd.f32 %v2354_v41, %v433_v45 }
 0x351   :  { %v2555_v47 = vpop.f32.mrf.mxu1 }
 0x352   :  { %v438_v49 = vmax.f32 %v434_v46, 0.0 }
 0x354   :  { %v439_v50 = vpack.c.bf16 %v438_v49, %v437_v48 }
 0x356   :  { %2561 = vmatmul.mubr.msk.bf16.vlgmr.msra.gmra.mxu0 %vm221_vm2, %v439_v50 }
 0x357   :  { %2572 = vmatprep.mubr.msk.bf16.mxu0 %vm2906_vm0, %v2905_v1 }
 0x416   :  { %v494_v51 = vpop.f32.mrf.mxu0 }
 0x418   :  { %v2562_v52 = vpop.f32.mrf.mxu0 }
 0x41a   :  { %v497_v53 = vpop.f32.mrf.mxu0 }
 0x41b   :  { %v501_v54 = vpack.c.bf16 %v497_v53, %v494_v51 }
 0x41c   :  { %v2563_v55 = vpop.f32.mrf.mxu0 }
 0x41d   :  { %2565 = vmatpush3.bf16.msra.mxu1 %v501_v54  ;;  %v3196_v54 = vld [vmem:[%s3422_s10] ss:$0 sm:$0xff] }
 0x41e   :  { %2576 = vmatprep.subr.bf16.mxu1 %v2905_v1 }
 0x420   :  { %2567 = vmatmul.mubr.msk.bf16.vlgmr.msra.gmra.mxu1 %vm100_vm1, %v2791_v34 }
 0x421   :  { %2578 = vmatprep.mubr.msk.bf16.mxu1 %vm2906_vm0, %v2905_v1 }
 0x4e0   :  { %v544_v56 = vpop.f32.mrf.mxu1 }
 0x4e1   :  { %v3087_v60 = vadd.f32 %v2365_v57, %v544_v56 }
 0x4e2   :  { %v2568_v58 = vpop.f32.mrf.mxu1 }
 0x4e4   :  { %v547_v59 = vpop.f32.mrf.mxu1 }
 0x4e5   :  { %v3089_v61 = vadd.f32 %v2365_v57, %v547_v59 }
 0x4e6   :  { %v2569_v62 = vpop.f32.mrf.mxu1 }
 0x4e7   :  { %v552_v63 = vpack.c.bf16 %v3089_v61, %v3087_v60 }
 0x4e9   :  { %2577 = vmatpush3.bf16.msra.mxu1 %v552_v63  ;;  %v558_v0 = vsel %vm553_vm3, %v552_v63, 0 }
 0x4ea   :  { %2571 = vmatpush3.bf16.xpose.msra.mxu0 %v558_v0  ;;  %2588 = vmatprep.subr.bf16.mxu1 %v2905_v1 }
 0x4eb   :  { %2582 = vmatprep.subr.bf16.mxu0 %v2905_v1 }
 0x4f1   :  { %2573 = vmatmul.mubr.msk.bf16.vlgmr.msra.gmra.mxu0 %vm553_vm3, %v551_v5 }
 0x4f2   :  { %2583 = vmatpush3.bf16.msra.mxu0 %v551_v5  ;;  %2584 = vmatprep.mubr.msk.bf16.mxu0 %vm2906_vm0, %v2905_v1 }
 0x4f3   :  { %2594 = vmatprep.subr.bf16.mxu0 %v2905_v1 }
 0x5b1   :  { %v594_v6 = vpop.f32.mrf.mxu0 }
 0x5b2   :  { %2807 = vtanh.f32 %v594_v6 }
 0x5b3   :  { %v2574_v7 = vpop.f32.mrf.mxu0 }
 0x5b5   :  { %v597_v8 = vpop.f32.mrf.mxu0 }
 0x5b6   :  { %2809 = vtanh.f32 %v597_v8 }
 0x5b7   :  { %v2575_v9 = vpop.f32.mrf.mxu0 }
 0x5bf   :  { %v2808_v10 = vpop.eup %2807 }
 0x5c0   :  { %v605_v14 = vmul.f32 %v2808_v10, %v603_v11 }
 0x5c3   :  { %v2810_v13 = vpop.eup %2809 }
 0x5c4   :  { %v606_v15 = vmul.f32 %v2810_v13, %v604_v12 }
 0x5c6   :  { %v607_v17 = vpack.c.bf16 %v606_v15, %v605_v14 }
 0x5c8   :  { %652 = vxpose.xlu0.c.b16.start.end [1/1] (short) (narrow) %v607_v17, 16  ;;  %2579 = vmatmul.mubr.msk.bf16.vlgmr.msra.gmra.mxu1 %vm100_vm1, %v607_v17 }
 0x5c9   :  { %2589 = vmatpush3.bf16.msra.mxu1 %v3118_v16  ;;  %2590 = vmatprep.mubr.msk.bf16.mxu1 %vm2906_vm0, %v2905_v1 }
 0x5ca   :  { %2600 = vmatprep.subr.bf16.mxu1 %v2905_v1 }
 0x5d0   :  { %2591 = vmatmul.mubr.bf16.vlgmr.msra.gmra.mxu1 %v2907_v19 }
 0x5d1   :  { %2601 = vmatpush3.bf16.msra.mxu1 %v3128_v18  ;;  %2602 = vmatprep.mubr.msk.bf16.mxu1 %vm2906_vm0, %v2905_v1 }
 0x5d2   :  { %2612 = vmatprep.subr.bf16.mxu1 %v2905_v1 }
 0x5d8   :  { %2603 = vmatmul.mubr.bf16.vlgmr.msra.gmra.mxu1 %v2907_v19 }
 0x5d9   :  { %2613 = vmatpush3.bf16.msra.mxu1 %v3137_v20  ;;  %2614 = vmatprep.mubr.msk.bf16.mxu1 %vm2906_vm0, %v2905_v1 }
 0x5da   :  { %2624 = vmatprep.subr.bf16.mxu1 %v2905_v1 }
 0x5e0   :  { %2615 = vmatmul.mubr.bf16.vlgmr.msra.gmra.mxu1 %v2907_v19 }
 0x5e1   :  { %2625 = vmatpush3.bf16.msra.mxu1 %v3146_v21  ;;  %2626 = vmatprep.mubr.msk.bf16.mxu1 %vm2906_vm0, %v2905_v1 }
 0x5e2   :  { %2636 = vmatprep.subr.bf16.mxu1 %v2905_v1 }
 0x5e8   :  { %2627 = vmatmul.mubr.bf16.vlgmr.msra.gmra.mxu1 %v2907_v19 }
 0x5e9   :  { %2638 = vmatprep.mubr.msk.bf16.mxu1 %vm2906_vm0, %v2905_v1 }
 0x62a   :  { %v660_v23 = vpop.trf.xlu0 }
 0x62b   :  { %2585 = vmatmul.mubr.msk.bf16.vlgmr.msra.gmra.mxu0 %vm100_vm1, %v660_v23 }
 0x62c   :  { %2595 = vmatpush3.bf16.msra.mxu0 %v3157_v22  ;;  %2596 = vmatprep.mubr.msk.bf16.mxu0 %vm2906_vm0, %v2905_v1 }
 0x62d   :  { %2606 = vmatprep.subr.bf16.mxu0 %v2905_v1 }
 0x633   :  { %2597 = vmatmul.mubr.bf16.vlgmr.msra.gmra.mxu0 %v2907_v19 }
 0x634   :  { %2607 = vmatpush3.bf16.msra.mxu0 %v3167_v24  ;;  %2608 = vmatprep.mubr.msk.bf16.mxu0 %vm2906_vm0, %v2905_v1 }
 0x635   :  { %2618 = vmatprep.subr.bf16.mxu0 %v2905_v1 }
 0x63b   :  { %2609 = vmatmul.mubr.bf16.vlgmr.msra.gmra.mxu0 %v2907_v19 }
 0x63c   :  { %2619 = vmatpush3.bf16.msra.mxu0 %v3176_v25  ;;  %2620 = vmatprep.mubr.msk.bf16.mxu0 %vm2906_vm0, %v2905_v1 }
 0x63d   :  { %2630 = vmatprep.subr.bf16.mxu0 %v2905_v1 }
 0x643   :  { %2621 = vmatmul.mubr.bf16.vlgmr.msra.gmra.mxu0 %v2907_v19 }
 0x644   :  { %2631 = vmatpush3.bf16.msra.mxu0 %v3185_v26  ;;  %2632 = vmatprep.mubr.msk.bf16.mxu0 %vm2906_vm0, %v2905_v1 }
 0x645   :  { %2642 = vmatprep.subr.bf16.mxu0 %v2905_v1 }
 0x64b   :  { %2633 = vmatmul.mubr.bf16.vlgmr.msra.gmra.mxu0 %v2907_v19 }
 0x64c   :  { %2644 = vmatprep.mubr.msk.bf16.mxu0 %vm2906_vm0, %v2905_v1 }
 0x688   :  { %v645_v27 = vpop.f32.mrf.mxu1 }
 0x68a   :  { %v2580_v28 = vpop.f32.mrf.mxu1 }
 0x68c   :  { %v648_v29 = vpop.f32.mrf.mxu1 }
 0x68d   :  { %v2774_v30 = vpack.i.bf16 %v648_v29, %v645_v27 }
 0x68e   :  { %v2581_v31 = vpop.f32.mrf.mxu1 }
 0x68f   :  { %2775 = vrot.lane.b32.xlu0 %v2774_v30, %s2908_s5 }
 0x690   :  { %v786_v32 = vpop.f32.mrf.mxu1 }
 0x692   :  { %v2592_v33 = vpop.f32.mrf.mxu1 }
 0x694   :  { %v789_v34 = vpop.f32.mrf.mxu1 }
 0x696   :  { %v2593_v35 = vpop.f32.mrf.mxu1 }
 0x698   :  { %v892_v36 = vpop.f32.mrf.mxu1 }
 0x69a   :  { %v2604_v37 = vpop.f32.mrf.mxu1 }
 0x69b   :  { %v3228_v37 = vld [vmem:[%s3422_s10 + $0x2] ss:$0 sm:$0xff] }
 0x69c   :  { %v895_v38 = vpop.f32.mrf.mxu1 }
 0x69e   :  { %v2605_v39 = vpop.f32.mrf.mxu1 }
 0x6a0   :  { %v999_v40 = vpop.f32.mrf.mxu1 }
 0x6a2   :  { %v2616_v41 = vpop.f32.mrf.mxu1 }
 0x6a4   :  { %v1002_v42 = vpop.f32.mrf.mxu1 }
 0x6a6   :  { %v2617_v43 = vpop.f32.mrf.mxu1 }
 0x6a8   :  { %v1106_v44 = vpop.f32.mrf.mxu1 }
 0x6aa   :  { %v2628_v45 = vpop.f32.mrf.mxu1 }
 0x6ac   :  { %v1109_v46 = vpop.f32.mrf.mxu1 }
 0x6ae   :  { %v2629_v47 = vpop.f32.mrf.mxu1 }
 0x6eb   :  { %v705_v48 = vpop.f32.mrf.mxu0 }
 0x6ed   :  { %v2586_v49 = vpop.f32.mrf.mxu0 }
 0x6ef   :  { %v708_v50 = vpop.f32.mrf.mxu0 }
 0x6f0   :  { %v2779_v51 = vpack.i.bf16 %v708_v50, %v705_v48 }
 0x6f1   :  { %v2587_v52 = vpop.f32.mrf.mxu0 }
 0x6f2   :  { %2780 = vrot.lane.b32.xlu1 %v2779_v51, %s2908_s5 }
 0x6f3   :  { %v832_v53 = vpop.f32.mrf.mxu0 }
 0x6f4   :  { %v833_v55 = vadd.f32 %v832_v53, %v786_v32  ;;  %v3222_v32 = vld [vmem:[%s3422_s10 + $0x3] ss:$0 sm:$0xff] }
 0x6f5   :  { %v2598_v56 = vpop.f32.mrf.mxu0 }
 0x6f6   :  { %v845_v57 = vadd.f32 %v3196_v54, %v833_v55 }
 0x6f7   :  { %v835_v58 = vpop.f32.mrf.mxu0 }
 0x6f8   :  { %v1167_v59 = vsub.f32 0.0, %v845_v57 }
 0x6f9   :  { %v2599_v62 = vpop.f32.mrf.mxu0 }
 0x6fa   :  { %v1168_v63 = vmul.f32 1.442695, %v1167_v59 }
 0x6fb   :  { %v938_v0 = vpop.f32.mrf.mxu0 }
 0x6fc   :  { %2811 = vpow2.f32 %v1168_v63  ;;  %v939_v5 = vadd.f32 %v938_v0, %v892_v36 }
 0x6fd   :  { %v2610_v6 = vpop.f32.mrf.mxu0 }
 0x6fe   :  { %v952_v7 = vadd.f32 %v3202_v2, %v939_v5 }
 0x6ff   :  { %v941_v8 = vpop.f32.mrf.mxu0 }
 0x700   :  { %v1175_v9 = vsub.f32 0.0, %v952_v7 }
 0x701   :  { %v2776_v10 = vpop.permute.xlu0 %2775  ;;  %v2611_v11 = vpop.f32.mrf.mxu0 }
 0x702   :  { %v1176_v12 = vmul.f32 1.442695, %v1175_v9  ;;  %v2778_v13 = vunpack.i.h.bf16 %v2776_v10  ;;  %v2777_v14 = vunpack.i.l.bf16 %v2776_v10 }
 0x703   :  { %v1045_v15 = vpop.f32.mrf.mxu0 }
 0x704   :  { %2813 = vpow2.f32 %v1176_v12  ;;  %v721_v17 = vsel %vm553_vm3, %v3098_v3, %v2778_v13  ;;  %v720_v19 = vsel %vm553_vm3, %v3101_v4, %v2777_v14  ;;  %v1046_v35 = vadd.f32 %v1045_v15, %v999_v40 }
 0x705   :  { %v3209_v23 = vpack.c.bf16 %v721_v17, %v720_v19  ;;  %v2622_v27 = vpop.f32.mrf.mxu0 }
 0x706   :  { %v1059_v45 = vadd.f32 %v3228_v37, %v1046_v35 }
 0x707   :  { %2643 = vmatpush3.bf16.msra.mxu0 %v3209_v23  ;;  %v3214_v28 = vsel %vm100_vm1, %v3209_v23, 0  ;;  %v1048_v29 = vpop.f32.mrf.mxu0 }
 0x708   :  { %2637 = vmatpush3.bf16.xpose.msra.mxu1 %v3214_v28  ;;  %2654 = vmatprep.subr.bf16.mxu0 %v2905_v1 }
 0x709   :  { %v2812_v30 = vpop.eup %2811  ;;  %v2623_v31 = vpop.f32.mrf.mxu0  ;;  %2648 = vmatprep.subr.bf16.mxu1 %v2905_v1 }
 0x70a   :  { %v1170_v3 = vadd.f32 1.0, %v2812_v30  ;;  %v3270_v31 = vld [vmem:[%s3414_s2 + $0x2] sm:$0x3] }
 0x70b   :  { %v1152_v4 = vpop.f32.mrf.mxu0  ;;  %vm738_vm6 = vcmp.gt.f32.partialorder %v3270_v31, 0.0 }
 0x70c   :  { %2815 = vrcp.f32 %v1170_v3  ;;  %v1153_v33 = vadd.f32 %v1152_v4, %v1106_v44 }
 0x70d   :  { %v2634_v34 = vpop.f32.mrf.mxu0 }
 0x70e   :  { %v1166_v36 = vadd.f32 %v3222_v32, %v1153_v33 }
 0x70f   :  { %v1155_v38 = vpop.f32.mrf.mxu0 }
 0x710   :  { %v1184_v39 = vsub.f32 0.0, %v1166_v36 }
 0x711   :  { %v2814_v41 = vpop.eup %2813  ;;  %v2635_v42 = vpop.f32.mrf.mxu0 }
 0x712   :  { %v1178_v43 = vadd.f32 1.0, %v2814_v41  ;;  %v1185_v46 = vmul.f32 1.442695, %v1184_v39 }
 0x714   :  { %2817 = vrcp.f32 %v1178_v43 }
 0x715   :  { %2819 = vpow2.f32 %v1185_v46 }
 0x716   :  { %2821 = vtanh.f32 %v1059_v45 }
 0x719   :  { %v2816_v44 = vpop.eup %2815 }
 0x71a   :  { %v1172_v40 = vmul.f32 %v2816_v44, %v1170_v3 }
 0x71c   :  { %v1173_v47 = vsub.f32 2.0, %v1172_v40 }
 0x71e   :  { %v1174_v50 = vmul.f32 %v2816_v44, %v1173_v47 }
 0x721   :  { %v2818_v48 = vpop.eup %2817 }
 0x722   :  { %v2820_v49 = vpop.eup %2819  ;;  %v1180_v51 = vmul.f32 %v2818_v48, %v1178_v43 }
 0x723   :  { %v2822_v52 = vpop.eup %2821  ;;  %v1187_v53 = vadd.f32 1.0, %v2820_v49 }
 0x724   :  { %v1181_v55 = vsub.f32 2.0, %v1180_v51  ;;  %v1193_v57 = vmul.f32 %v2822_v52, %v1174_v50 }
 0x725   :  { %2823 = vrcp.f32 %v1187_v53 }
 0x726   :  { %v1182_v56 = vmul.f32 %v2818_v48, %v1181_v55 }
 0x728   :  { %v1192_v58 = vmul.f32 0.0, %v1182_v56 }
 0x72a   :  { %v3231_v59 = vadd.f32 %v1193_v57, %v1192_v58 }
 0x72c   :  { %2825 = vtanh.f32 %v3231_v59 }
 0x732   :  { %v2824_v62 = vpop.eup %2823 }
 0x733   :  { %v1189_v63 = vmul.f32 %v2824_v62, %v1187_v53 }
 0x735   :  { %v1190_v0 = vsub.f32 2.0, %v1189_v63 }
 0x737   :  { %v1191_v5 = vmul.f32 %v2824_v62, %v1190_v0 }
 0x739   :  { %v2826_v6 = vpop.eup %2825 }
 0x73a   :  { %v1196_v7 = vmul.f32 %v2826_v6, %v1191_v5 }
 0x73c   :  { %v3234_v8 = vpack.c.bf16 %v1196_v7, %v1196_v7 }
 0x73e   :  { %2639 = vmatmul.mubr.msk.bf16.vlgmr.msra.gmra.mxu1 %vm100_vm1, %v3234_v8  ;;  %v1307_v17 = vrot.slane %v3234_v8, 1 }
 0x73f   :  { %2650 = vmatprep.mubr.msk.bf16.mxu1 %vm2906_vm0, %v2905_v1 }
 0x764   :  { %v2781_v9 = vpop.permute.xlu1 %2780 }
 0x765   :  { %v2783_v10 = vunpack.i.h.bf16 %v2781_v9  ;;  %v2782_v11 = vunpack.i.l.bf16 %v2781_v9 }
 0x767   :  { %v732_v12 = vsel %vm553_vm3, %v3089_v61, %v2783_v10  ;;  %v731_v13 = vsel %vm553_vm3, %v3087_v60, %v2782_v11  ;;  %v3261_v60 = vld [vmem:[%s3414_s2] sm:$0x3] }
 0x768   :  { %v3244_v14 = vpack.c.bf16 %v732_v12, %v731_v13  ;;  %vm737_vm4 = vcmp.gt.f32.partialorder %v3261_v60, 0.0 }
 0x76a   :  { %v3248_v15 = vsel %vm100_vm1, %v3244_v14, 0 }
 0x76b   :  { %2649 = vmatpush3.bf16.xpose.msra.mxu1 %v3248_v15 }
 0x76c   :  { %2660 = vmatprep.subr.bf16.mxu1 %v2905_v1 }
 0x772   :  { %2651 = vmatmul.mubr.msk.bf16.vlgmr.msra.gmra.mxu1 %vm100_vm1, %v1307_v17 }
 0x773   :  { %2661 = vmatpush3.bf16.msra.mxu1 %v3118_v16  ;;  %2662 = vmatprep.mubr.msk.bf16.mxu1 %vm2906_vm0, %v2905_v1 }
 0x774   :  { %2672 = vmatprep.subr.bf16.mxu1 %v2905_v1 }
 0x7fe   :  { %v1238_v61 = vpop.f32.mrf.mxu1 }
 0x7ff   :  { %v1244_v19 = vsel %vm737_vm4, %v1238_v61, -1e+30 }
 0x800   :  { %v1246_v27 = vsel %vm1245_vm5, %v1244_v19, -inf  ;;  %v2640_v16 = vpop.f32.mrf.mxu1 }
 0x801   :  { %1247 = vmax.xlane.f32.xlu1 %v1246_v27 }
 0x802   :  { %v1241_v29 = vpop.f32.mrf.mxu1 }
 0x804   :  { %v2641_v30 = vpop.f32.mrf.mxu1 }
 0x832   :  { %v1348_v3 = vpop.f32.mrf.mxu1 }
 0x833   :  { %v1354_v4 = vsel %vm738_vm6, %v1348_v3, -1e+30 }
 0x834   :  { %v2652_v33 = vpop.f32.mrf.mxu1  ;;  %v1355_v34 = vsel %vm1245_vm5, %v1354_v4, -inf }
 0x835   :  { %1356 = vmax.xlane.f32.xlu0 %v1355_v34 }
 0x836   :  { %v1351_v35 = vpop.f32.mrf.mxu1 }
 0x838   :  { %v2653_v36 = vpop.f32.mrf.mxu1 }
 0x88a   :  { %v1248_v38 = vpop.xlane.xlu1 %1247 }
 0x88b   :  { %v1249_v39 = vsub.f32 %v1244_v19, %v1248_v38 }
 0x88d   :  { %v1250_v41 = vmul.f32 1.442695, %v1249_v39 }
 0x88f   :  { %2827 = vpow2.f32 %v1250_v41 }
 0x89c   :  { %v2828_v42 = vpop.eup %2827 }
 0x89d   :  { %v1252_v43 = vmul.f32 %v2828_v42, %v3261_v60 }
 0x89f   :  { %v1253_v45 = vsel %vm1245_vm5, %v1252_v43, 0.0 }
 0x8a0   :  { %1254 = vadd.xlane.f32.xlu1 %v1253_v45 }
 0x8be   :  { %v1357_v46 = vpop.xlane.xlu0 %1356 }
 0x8bf   :  { %v1358_v44 = vsub.f32 %v1354_v4, %v1357_v46 }
 0x8c1   :  { %v1359_v40 = vmul.f32 1.442695, %v1358_v44 }
 0x8c3   :  { %2829 = vpow2.f32 %v1359_v40 }
 0x8d0   :  { %v2830_v47 = vpop.eup %2829 }
 0x8d1   :  { %v1361_v48 = vmul.f32 %v2830_v47, %v3270_v31 }
 0x8d3   :  { %v1362_v49 = vsel %vm1245_vm5, %v1361_v48, 0.0 }
 0x8d4   :  { %1363 = vadd.xlane.f32.xlu0 %v1362_v49 }
 0x929   :  { %v1255_v50 = vpop.xlane.xlu1 %1254 }
 0x92a   :  { %v1256_v51 = vmax.f32 %v1255_v50, 1e-20 }
 0x92c   :  { %2831 = vrcp.f32 %v1256_v51 }
 0x939   :  { %v2832_v52 = vpop.eup %2831 }
 0x93a   :  { %v1258_v53 = vmul.f32 %v2832_v52, %v1256_v51 }
 0x93c   :  { %v1259_v55 = vsub.f32 2.0, %v1258_v53 }
 0x93e   :  { %v1260_v56 = vmul.f32 %v2832_v52, %v1259_v55 }
 0x940   :  { %v1261_v57 = vmul.f32 %v1260_v56, %v1252_v43 }
 0x942   :  { %v1262_v58 = vpack.c.bf16 %v1261_v57, %v1261_v57 }
 0x944   :  { %2645 = vmatmul.mubr.msk.bf16.vlgmr.msra.gmra.mxu0 %vm100_vm1, %v1262_v58 }
 0x945   :  { %2655 = vmatpush3.bf16.msra.mxu0 %v3244_v14  ;;  %2656 = vmatprep.mubr.msk.bf16.mxu0 %vm2906_vm0, %v2905_v1 }
 0x946   :  { %2666 = vmatprep.subr.bf16.mxu0 %v2905_v1 }
 0x95d   :  { %v1364_v62 = vpop.xlane.xlu0 %1363 }
 0x95e   :  { %v1365_v63 = vmax.f32 %v1364_v62, 1e-20 }
 0x960   :  { %2833 = vrcp.f32 %v1365_v63 }
 0x96d   :  { %v2834_v0 = vpop.eup %2833 }
 0x96e   :  { %v1367_v5 = vmul.f32 %v2834_v0, %v1365_v63 }
 0x970   :  { %v1368_v6 = vsub.f32 2.0, %v1367_v5 }
 0x972   :  { %v1369_v7 = vmul.f32 %v2834_v0, %v1368_v6 }
 0x974   :  { %v1370_v9 = vmul.f32 %v1369_v7, %v1361_v48 }
 0x976   :  { %v1371_v10 = vpack.c.bf16 %v1370_v9, %v1370_v9 }
 0x978   :  { %2657 = vmatmul.mubr.msk.bf16.vlgmr.msra.gmra.mxu0 %vm100_vm1, %v1371_v10 }
 0x979   :  { %2667 = vmatpush3.bf16.msra.mxu0 %v3157_v22  ;;  %2668 = vmatprep.mubr.msk.bf16.mxu0 %vm2906_vm0, %v2905_v1 }
 0x97a   :  { %2678 = vmatprep.subr.bf16.mxu0 %v2905_v1 }
 0x980   :  { %2669 = vmatmul.mubr.msk.bf16.vlgmr.msra.gmra.mxu0 %vm100_vm1, %v3234_v8 }
 0x981   :  { %2679 = vmatpush3.bf16.msra.mxu0 %v3167_v24  ;;  %2680 = vmatprep.mubr.msk.bf16.mxu0 %vm2906_vm0, %v2905_v1 }
 0x982   :  { %2690 = vmatprep.subr.bf16.mxu0 %v2905_v1 }
 0x988   :  { %2681 = vmatmul.mubr.msk.bf16.vlgmr.msra.gmra.mxu0 %vm100_vm1, %v3234_v8 }
 0x989   :  { %2691 = vmatpush3.bf16.msra.mxu0 %v3176_v25  ;;  %2692 = vmatprep.mubr.msk.bf16.mxu0 %vm2906_vm0, %v2905_v1 }
 0x98a   :  { %2702 = vmatprep.subr.bf16.mxu0 %v2905_v1 }
 0x990   :  { %2693 = vmatmul.mubr.msk.bf16.vlgmr.msra.gmra.mxu0 %vm100_vm1, %v3234_v8 }
 0x991   :  { %2703 = vmatpush3.bf16.msra.mxu0 %v3185_v26  ;;  %2704 = vmatprep.mubr.msk.bf16.mxu0 %vm2906_vm0, %v2905_v1 }
 0x992   :  { %2714 = vmatprep.subr.bf16.mxu0 %v2905_v1 }
 0x998   :  { %2705 = vmatmul.mubr.msk.bf16.vlgmr.msra.gmra.mxu0 %vm100_vm1, %v3234_v8 }
 0x999   :  { %2715 = vmatpush3.bf16.msra.mxu0 %v3209_v23  ;;  %2716 = vmatprep.mubr.msk.bf16.mxu0 %vm2906_vm0, %v2905_v1 }
 0x99a   :  { %2726 = vmatprep.subr.bf16.mxu0 %v2905_v1 }
 0xa04   :  { %v1300_v22 = vpop.f32.mrf.mxu0 }
 0xa06   :  { %v2646_v24 = vpop.f32.mrf.mxu0 }
 0xa08   :  { %v1303_v25 = vpop.f32.mrf.mxu0 }
 0xa0a   :  { %v2647_v11 = vpop.f32.mrf.mxu0 }
 0xa38   :  { %v1409_v26 = vpop.f32.mrf.mxu0 }
 0xa39   :  { %v1416_v12 = vrot.slane %v1409_v26, 6 }
 0xa3a   :  { %v2658_v13 = vpop.f32.mrf.mxu0 }
 0xa3b   :  { %v1419_v17 = vsel %vm1418_vm7, %v1300_v22, %v1416_v12 }
 0xa3c   :  { %v1420_v61 = vpack.c.bf16 %v1419_v17, %v1419_v17  ;;  %v1412_v19 = vpop.f32.mrf.mxu0 }
 0xa3e   :  { %v2659_v8 = vpop.f32.mrf.mxu0  ;;  %2663 = vmatmul.mubr.msk.bf16.vlgmr.msra.gmra.mxu1 %vm100_vm1, %v1420_v61 }
 0xa3f   :  { %2673 = vmatpush3.bf16.msra.mxu1 %v3128_v18  ;;  %2674 = vmatprep.mubr.msk.bf16.mxu1 %vm2906_vm0, %v2905_v1 }
 0xa40   :  { %v1498_v23 = vpop.f32.mrf.mxu0  ;;  %2684 = vmatprep.subr.bf16.mxu1 %v2905_v1 }
 0xa42   :  { %v2670_v27 = vpop.f32.mrf.mxu0 }
 0xa44   :  { %v1501_v16 = vpop.f32.mrf.mxu0 }
 0xa46   :  { %v2671_v29 = vpop.f32.mrf.mxu0  ;;  %2675 = vmatmul.mubr.msk.bf16.vlgmr.msra.gmra.mxu1 %vm100_vm1, %v1420_v61 }
 0xa47   :  { %2685 = vmatpush3.bf16.msra.mxu1 %v3137_v20  ;;  %2686 = vmatprep.mubr.msk.bf16.mxu1 %vm2906_vm0, %v2905_v1 }
 0xa48   :  { %v1579_v30 = vpop.f32.mrf.mxu0  ;;  %2696 = vmatprep.subr.bf16.mxu1 %v2905_v1 }
 0xa4a   :  { %v2682_v18 = vpop.f32.mrf.mxu0 }
 0xa4c   :  { %v1582_v3 = vpop.f32.mrf.mxu0 }
 0xa4e   :  { %v2683_v4 = vpop.f32.mrf.mxu0  ;;  %2687 = vmatmul.mubr.msk.bf16.vlgmr.msra.gmra.mxu1 %vm100_vm1, %v1420_v61 }
 0xa4f   :  { %2697 = vmatpush3.bf16.msra.mxu1 %v3146_v21  ;;  %2698 = vmatprep.mubr.msk.bf16.mxu1 %vm2906_vm0, %v2905_v1 }
 0xa50   :  { %v1660_v33 = vpop.f32.mrf.mxu0  ;;  %2708 = vmatprep.subr.bf16.mxu1 %v2905_v1 }
 0xa52   :  { %v2694_v20 = vpop.f32.mrf.mxu0 }
 0xa54   :  { %v1663_v34 = vpop.f32.mrf.mxu0 }
 0xa56   :  { %v2695_v35 = vpop.f32.mrf.mxu0  ;;  %2699 = vmatmul.mubr.msk.bf16.vlgmr.msra.gmra.mxu1 %vm100_vm1, %v1420_v61 }
 0xa57   :  { %2709 = vmatpush3.bf16.xpose.msra.mxu1 %v3214_v28  ;;  %2710 = vmatprep.mubr.msk.bf16.mxu1 %vm2906_vm0, %v2905_v1 }
 0xa58   :  { %v1741_v36 = vpop.f32.mrf.mxu0  ;;  %2720 = vmatprep.subr.bf16.mxu1 %v2905_v1 }
 0xa5a   :  { %v2706_v21 = vpop.f32.mrf.mxu0 }
 0xa5c   :  { %v1744_v38 = vpop.f32.mrf.mxu0 }
 0xa5e   :  { %v2707_v39 = vpop.f32.mrf.mxu0 }
 0xafe   :  { %v1458_v41 = vpop.f32.mrf.mxu1 }
 0xaff   :  { %v1499_v42 = vadd.f32 %v1498_v23, %v1458_v41 }
 0xb00   :  { %v2664_v43 = vpop.f32.mrf.mxu1 }
 0xb01   :  { %v1504_v45 = vadd.f32 %v3196_v54, %v1499_v42 }
 0xb02   :  { %v1461_v46 = vpop.f32.mrf.mxu1 }
 0xb03   :  { %v1748_v44 = vsub.f32 0.0, %v1504_v45 }
 0xb04   :  { %v2665_v40 = vpop.f32.mrf.mxu1 }
 0xb05   :  { %v1749_v47 = vmul.f32 1.442695, %v1748_v44 }
 0xb06   :  { %v1539_v48 = vpop.f32.mrf.mxu1 }
 0xb07   :  { %2835 = vpow2.f32 %v1749_v47  ;;  %v1580_v28 = vadd.f32 %v1579_v30, %v1539_v48 }
 0xb08   :  { %v2676_v49 = vpop.f32.mrf.mxu1 }
 0xb09   :  { %v1585_v50 = vadd.f32 %v3202_v2, %v1580_v28 }
 0xb0a   :  { %v1542_v51 = vpop.f32.mrf.mxu1 }
 0xb0b   :  { %v1756_v52 = vsub.f32 0.0, %v1585_v50 }
 0xb0c   :  { %v2677_v53 = vpop.f32.mrf.mxu1 }
 0xb0d   :  { %v1757_v55 = vmul.f32 1.442695, %v1756_v52 }
 0xb0e   :  { %v1620_v56 = vpop.f32.mrf.mxu1 }
 0xb0f   :  { %2837 = vpow2.f32 %v1757_v55  ;;  %v1661_v25 = vadd.f32 %v1660_v33, %v1620_v56 }
 0xb10   :  { %v2688_v57 = vpop.f32.mrf.mxu1 }
 0xb11   :  { %v1666_v26 = vadd.f32 %v3228_v37, %v1661_v25 }
 0xb12   :  { %v1623_v58 = vpop.f32.mrf.mxu1 }
 0xb14   :  { %v2836_v62 = vpop.eup %2835  ;;  %v2689_v54 = vpop.f32.mrf.mxu1 }
 0xb15   :  { %v1751_v63 = vadd.f32 1.0, %v2836_v62 }
 0xb16   :  { %v1701_v0 = vpop.f32.mrf.mxu1 }
 0xb17   :  { %2839 = vrcp.f32 %v1751_v63  ;;  %v1742_v5 = vadd.f32 %v1741_v36, %v1701_v0 }
 0xb18   :  { %v2700_v6 = vpop.f32.mrf.mxu1 }
 0xb19   :  { %v1747_v7 = vadd.f32 %v3222_v32, %v1742_v5 }
 0xb1a   :  { %v1704_v9 = vpop.f32.mrf.mxu1 }
 0xb1b   :  { %v1765_v10 = vsub.f32 0.0, %v1747_v7 }
 0xb1c   :  { %v2838_v2 = vpop.eup %2837  ;;  %v2701_v22 = vpop.f32.mrf.mxu1 }
 0xb1d   :  { %v1759_v24 = vadd.f32 1.0, %v2838_v2  ;;  %v1766_v11 = vmul.f32 1.442695, %v1765_v10 }
 0xb1f   :  { %2841 = vrcp.f32 %v1759_v24 }
 0xb20   :  { %2843 = vpow2.f32 %v1766_v11 }
 0xb21   :  { %2845 = vtanh.f32 %v1666_v26 }
 0xb24   :  { %v2840_v12 = vpop.eup %2839 }
 0xb25   :  { %v1753_v13 = vmul.f32 %v2840_v12, %v1751_v63 }
 0xb27   :  { %v1754_v17 = vsub.f32 2.0, %v1753_v13 }
 0xb29   :  { %v1755_v32 = vmul.f32 %v2840_v12, %v1754_v17 }
 0xb2c   :  { %v2842_v61 = vpop.eup %2841 }
 0xb2d   :  { %v2844_v19 = vpop.eup %2843  ;;  %v1761_v8 = vmul.f32 %v2842_v61, %v1759_v24 }
 0xb2e   :  { %v1768_v23 = vadd.f32 1.0, %v2844_v19  ;;  %v2846_v29 = vpop.eup %2845 }
 0xb2f   :  { %v1762_v27 = vsub.f32 2.0, %v1761_v8  ;;  %v1774_v18 = vmul.f32 %v2846_v29, %v1755_v32  ;;  %v2804_v29 = vld [vmem:[%s3423_s11 + $0x8] sm:$0xff]  }
 0xb30   :  { %2847 = vrcp.f32 %v1768_v23 }
 0xb31   :  { %v1763_v16 = vmul.f32 %v2842_v61, %v1762_v27 }
 0xb33   :  { %v1773_v30 = vmul.f32 %v1763_v16, %v3231_v59  ;;  %v2802_v59 = vld [vmem:[%s3423_s11] sm:$0xff]  }
 0xb35   :  { %v1775_v3 = vadd.f32 %v1774_v18, %v1773_v30 }
 0xb37   :  { %2849 = vtanh.f32 %v1775_v3 }
 0xb3d   :  { %v2848_v4 = vpop.eup %2847 }
 0xb3e   :  { %v1770_v37 = vmul.f32 %v2848_v4, %v1768_v23 }
 0xb40   :  { %v1771_v33 = vsub.f32 2.0, %v1770_v37 }
 0xb42   :  { %v1772_v20 = vmul.f32 %v2848_v4, %v1771_v33 }
 0xb44   :  { %v2850_v34 = vpop.eup %2849 }
 0xb45   :  { %v1777_v35 = vmul.f32 %v2850_v34, %v1772_v20  ;;  %v2805_v34 = vld [vmem:[%s3423_s11 + $0x18] sm:$0xff]  }
 0xb47   :  { %v1778_v36 = vpack.c.bf16 %v1777_v35, %v1777_v35 }
 0xb49   :  { %2711 = vmatmul.mubr.msk.bf16.vlgmr.msra.gmra.mxu1 %vm100_vm1, %v1778_v36  ;;  %v1884_v21 = vrot.slane %v1778_v36, 1 }
 0xb4a   :  { %2721 = vmatpush3.bf16.xpose.msra.mxu1 %v3248_v15  ;;  %2722 = vmatprep.mubr.msk.bf16.mxu1 %vm2906_vm0, %v2905_v1  ;;  %v2803_v15 = vld [vmem:[%s3423_s11 + $0x10] sm:$0xff]  }
 0xb4b   :  { %2732 = vmatprep.subr.bf16.mxu1 %v2905_v1 }
 0xb51   :  { %2723 = vmatmul.mubr.msk.bf16.vlgmr.msra.gmra.mxu1 %vm100_vm1, %v1884_v21 }
 0xb52   :  { %2733 = vmatpush3.bf16.msra.mxu1 %v2802_v59  ;;  %2734 = vmatprep.mubr.msk.bf16.mxu1 %vm2906_vm0, %v2905_v1 }
 0xb53   :  { %2744 = vmatprep.subr.bf16.mxu1 %v2905_v1 }
 0xb59   :  { %2735 = vmatmul.mubr.msk.bf16.vlgmr.msra.gmra.mxu1 %vm100_vm1, %v1778_v36 }
 0xb5a   :  { %2745 = vmatpush3.bf16.msra.mxu1 %v2803_v15  ;;  %2746 = vmatprep.mubr.msk.bf16.mxu1 %vm2906_vm0, %v2905_v1  ;;  %v2806_v15 = vld [vmem:[%s3425_s13] sm:$0xff]  }
 0xb5b   :  { %2756 = vmatprep.subr.bf16.mxu1 %v2905_v1 }
 0xb61   :  { %2747 = vmatmul.mubr.msk.bf16.vlgmr.msra.gmra.mxu1 %vm100_vm1, %v1884_v21 }
 0xb62   :  { %2758 = vmatprep.mubr.msk.bf16.mxu1 %vm2906_vm0, %v2905_v1  ;;  %2757 = vmatpush3.bf16.msra.mxu1 %v2806_v15 }
 0xc09   :  { %v1816_v38 = vpop.f32.mrf.mxu1 }
 0xc0a   :  { %v1822_v39 = vsel %vm737_vm4, %v1816_v38, -1e+30  ;;  %v2416_v38 = vld [vmem:[#allocation3] ss:$0 sm:$0xff] }
 0xc0b   :  { %v2712_v41 = vpop.f32.mrf.mxu1  ;;  %v1823_v42 = vsel %vm1245_vm5, %v1822_v39, -inf }
 0xc0c   :  { %1824 = vmax.xlane.f32.xlu1 %v1823_v42 }
 0xc0d   :  { %v1819_v43 = vpop.f32.mrf.mxu1 }
 0xc0f   :  { %v2713_v45 = vpop.f32.mrf.mxu1 }
 0xc11   :  { %v1922_v46 = vpop.f32.mrf.mxu1 }
 0xc12   :  { %v1928_v44 = vsel %vm738_vm6, %v1922_v46, -1e+30 }
 0xc13   :  { %v2724_v40 = vpop.f32.mrf.mxu1  ;;  %v1929_v47 = vsel %vm1245_vm5, %v1928_v44, -inf }
 0xc14   :  { %1930 = vmax.xlane.f32.xlu0 %v1929_v47 }
 0xc15   :  { %v1925_v48 = vpop.f32.mrf.mxu1 }
 0xc17   :  { %v2725_v28 = vpop.f32.mrf.mxu1 }
 0xc19   :  { %v3368_v49 = vpop.f32.mrf.mxu1 }
 0xc1a   :  { %v2048_v41 = vadd.f32 %v2416_v38, %v3368_v49 }
 0xc1b   :  { %v2736_v50 = vpop.f32.mrf.mxu1 }
 0xc1d   :  { %v2039_v51 = vpop.f32.mrf.mxu1 }
 0xc1f   :  { %v2737_v52 = vpop.f32.mrf.mxu1 }
 0xc20   :  { %v2270_v52 = vld [vmem:[%s3427_s15] sm:$0xf] }
 0xc21   :  { %v3370_v53 = vpop.f32.mrf.mxu1  ;;  %v2283_v49 = vsel %vm2281_vm8, %v2270_v52, 0 }
 0xc23   :  { %v2748_v55 = vpop.f32.mrf.mxu1 }
 0xc24   :  { %v2429_v55 = vld [vmem:[#allocation5] ss:$0 sm:$0xff] }
 0xc25   :  { %v2149_v56 = vpop.f32.mrf.mxu1 }
 0xc27   :  { %v2749_v57 = vpop.f32.mrf.mxu1 }
 0xc95   :  { %v1825_v58 = vpop.xlane.xlu1 %1824 }
 0xc96   :  { %v1826_v62 = vsub.f32 %v1822_v39, %v1825_v58 }
 0xc98   :  { %v1827_v54 = vmul.f32 1.442695, %v1826_v62 }
 0xc9a   :  { %2851 = vpow2.f32 %v1827_v54 }
 0xc9d   :  { %v1931_v63 = vpop.xlane.xlu0 %1930 }
 0xc9e   :  { %v1932_v0 = vsub.f32 %v1928_v44, %v1931_v63 }
 0xca0   :  { %v1933_v5 = vmul.f32 1.442695, %v1932_v0  ;;  %v2432_v0 = vld [vmem:[#allocation2] ss:$0 sm:$0xff] }
 0xca2   :  { %2853 = vpow2.f32 %v1933_v5 }
 0xca7   :  { %v2852_v6 = vpop.eup %2851 }
 0xca8   :  { %v1829_v7 = vmul.f32 %v2852_v6, %v3261_v60 }
 0xcaa   :  { %v1830_v9 = vsel %vm1245_vm5, %v1829_v7, 0.0 }
 0xcab   :  { %1831 = vadd.xlane.f32.xlu1 %v1830_v9 }
 0xcaf   :  { %v2854_v10 = vpop.eup %2853 }
 0xcb0   :  { %v1935_v2 = vmul.f32 %v2854_v10, %v3270_v31 }
 0xcb2   :  { %v1936_v22 = vsel %vm1245_vm5, %v1935_v2, 0.0 }
 0xcb3   :  { %1937 = vadd.xlane.f32.xlu0 %v1936_v22 }
 0xd34   :  { %v1832_v24 = vpop.xlane.xlu1 %1831 }
 0xd35   :  { %v1833_v25 = vmax.f32 %v1832_v24, 1e-20 }
 0xd37   :  { %2855 = vrcp.f32 %v1833_v25 }
 0xd3c   :  { %v1938_v11 = vpop.xlane.xlu0 %1937 }
 0xd3d   :  { %v1939_v26 = vmax.f32 %v1938_v11, 1e-20 }
 0xd3f   :  { %2857 = vrcp.f32 %v1939_v26 }
 0xd44   :  { %v2856_v12 = vpop.eup %2855 }
 0xd45   :  { %v1835_v13 = vmul.f32 %v2856_v12, %v1833_v25 }
 0xd47   :  { %v1836_v17 = vsub.f32 2.0, %v1835_v13 }
 0xd49   :  { %v1837_v61 = vmul.f32 %v2856_v12, %v1836_v17 }
 0xd4b   :  { %v1838_v60 = vmul.f32 %v1837_v61, %v1829_v7 }
 0xd4c   :  { %v2858_v19 = vpop.eup %2857 }
 0xd4d   :  { %v1839_v8 = vpack.c.bf16 %v1838_v60, %v1838_v60  ;;  %v1941_v23 = vmul.f32 %v2858_v19, %v1939_v26 }
 0xd4f   :  { %v1942_v32 = vsub.f32 2.0, %v1941_v23  ;;  %2717 = vmatmul.mubr.msk.bf16.vlgmr.msra.gmra.mxu0 %vm100_vm1, %v1839_v8 }
 0xd50   :  { %2727 = vmatpush3.bf16.msra.mxu0 %v3244_v14  ;;  %2728 = vmatprep.mubr.msk.bf16.mxu0 %vm2906_vm0, %v2905_v1 }
 0xd51   :  { %v1943_v31 = vmul.f32 %v2858_v19, %v1942_v32  ;;  %2738 = vmatprep.subr.bf16.mxu0 %v2905_v1 }
 0xd53   :  { %v1944_v27 = vmul.f32 %v1943_v31, %v1935_v2 }
 0xd55   :  { %v1945_v16 = vpack.c.bf16 %v1944_v27, %v1944_v27 }
 0xd57   :  { %2729 = vmatmul.mubr.msk.bf16.vlgmr.msra.gmra.mxu0 %vm100_vm1, %v1945_v16 }
 0xd58   :  { %2740 = vmatprep.mubr.msk.bf16.mxu0 %vm2906_vm0, %v2905_v1  ;;  %2739 = vmatpush3.bf16.msra.mxu0 %v2804_v29 }
 0xd59   :  { %2750 = vmatprep.subr.bf16.mxu0 %v2905_v1 }
 0xe0f   :  { %v1877_v14 = vpop.f32.mrf.mxu0 }
 0xe11   :  { %v2718_v30 = vpop.f32.mrf.mxu0 }
 0xe13   :  { %v1880_v18 = vpop.f32.mrf.mxu0 }
 0xe15   :  { %v2719_v3 = vpop.f32.mrf.mxu0 }
 0xe17   :  { %v1983_v4 = vpop.f32.mrf.mxu0 }
 0xe18   :  { %v1990_v37 = vrot.slane %v1983_v4, 6 }
 0xe19   :  { %v2730_v33 = vpop.f32.mrf.mxu0 }
 0xe1a   :  { %v1992_v20 = vsel %vm1418_vm7, %v1877_v14, %v1990_v37 }
 0xe1b   :  { %v2049_v35 = vpack.c.bf16 %v1992_v20, %v1992_v20  ;;  %v1986_v36 = vpop.f32.mrf.mxu0 }
 0xe1d   :  { %v2731_v59 = vpop.f32.mrf.mxu0  ;;  %2741 = vmatmul.mubr.msk.bf16.vlgmr.msra.gmra.mxu0 %vm100_vm1, %v2049_v35  ;;  %v2157_v21 = vrot.slane %v2049_v35, 1 }
 0xe1e   :  { %2751 = vmatpush3.bf16.msra.mxu0 %v2805_v34  ;;  %2752 = vmatprep.mubr.msk.bf16.mxu0 %vm2906_vm0, %v2905_v1 }
 0xe1f   :  { %2762 = vmatprep.subr.bf16.mxu0 %v2905_v1 }
 0xe25   :  { %2753 = vmatmul.mubr.msk.bf16.vlgmr.msra.gmra.mxu0 %vm100_vm1, %v2157_v21 }
 0xe26   :  { %2764 = vmatprep.mubr.msk.bf16.mxu0 %vm2906_vm0, %v2905_v1  ;;  %2763 = vmatpush3.bf16.msra.mxu0 %v2283_v49 }
 0xedd   :  { %v2096_v39 = vpop.f32.mrf.mxu0 }
 0xede   :  { %v2102_v43 = vadd.f32 %v2096_v39, %v2048_v41 }
 0xedf   :  { %v2742_v42 = vpop.f32.mrf.mxu0 }
 0xee0   :  { %v2152_v44 = vadd.f32 %v3370_v53, %v2102_v43 }
 0xee1   :  { %v2099_v45 = vpop.f32.mrf.mxu0 }
 0xee3   :  { %v2743_v46 = vpop.f32.mrf.mxu0 }
 0xee5   :  { %v2201_v40 = vpop.f32.mrf.mxu0 }
 0xee6   :  { %v2207_v47 = vadd.f32 %v2201_v40, %v2152_v44 }
 0xee7   :  { %v2754_v48 = vpop.f32.mrf.mxu0 }
 0xee8   :  { %v2208_v28 = vmax.f32 %v2207_v47, 0.0 }
 0xee9   :  { %v2204_v1 = vpop.f32.mrf.mxu0 }
 0xeea   :  { %v2209_v50 = vpack.c.bf16 %v2208_v28, %v2208_v28 }
 0xeeb   :  { %v2755_v51 = vpop.f32.mrf.mxu0 }
 0xeec   :  { %2759 = vmatmul.mubr.msk.bf16.vlgmr.msra.gmra.mxu1 %vm100_vm1, %v2209_v50 }
 0xfac   :  { %v2262_v56 = vpop.f32.mrf.mxu1 }
 0xfad   :  { %v2263_v57 = vadd.f32 %v2429_v55, %v2262_v56 }
 0xfae   :  { %v2760_v53 = vpop.f32.mrf.mxu1 }
 0xfaf   :  { %v2268_v58 = vmax.f32 %v2263_v57, 0.0 }
 0xfb0   :  { %v2265_v62 = vpop.f32.mrf.mxu1 }
 0xfb1   :  { %v2269_v54 = vpack.c.bf16 %v2268_v58, %v2268_v58 }
 0xfb2   :  { %v2761_v63 = vpop.f32.mrf.mxu1 }
 0xfb3   :  { %2765 = vmatmul.mubr.msk.bf16.vlgmr.msra.gmra.mxu0 %vm553_vm3, %v2269_v54 }
0x1073   :  { %v2319_v5 = vpop.f32.mrf.mxu0 }
0x1074   :  { %v2320_v6 = vadd.f32 %v2432_v0, %v2319_v5 }
0x1075   :  { %v2766_v7 = vpop.f32.mrf.mxu0 }
0x1076   :  { %2326 = vst.msk [vmem:[%s3429_s17] sm:$0x3] %vm2325_vm9, %v2320_v6 }
0x1077   :  { %v2322_v9 = vpop.f32.mrf.mxu0 }
0x1079   :  { %v2767_v10 = vpop.f32.mrf.mxu0 }
0x107a   :  { %2331 = vsyncpa [#allocation4], 1 }
0x107b   :  { %2332 = vsyncpa [#allocation6], 1 }

</bundles_post_ra>
